<compile_context>
chip_gen: v5e
topology: v5e:2x2
jax: 0.10.0
libtpu: 0.0.40
codegen_flags: <defaults>
</compile_context>

<pallas_src>
import math

import jax
import jax.numpy as jnp
from jax.experimental import pallas as pl
from jax.experimental.pallas import tpu as pltpu  # noqa: F401  (TPU backend selected by default)

# ----------------------------- model dimensions -----------------------------
VOCAB = 100
MAX_POS = 16
HIDDEN = 32
NUM_HEADS = 2
HEAD_DIM = HIDDEN // NUM_HEADS
FFN = 64
NUM_LAYERS = 2
NUM_LABELS = 2
BATCH = 2
SEQ = 8
LN_EPS = 1e-12
CLS_PAD = 4 * HIDDEN  # 128-lane-dense classifier output width (sliced to NUM_LABELS in wrapper)


# ------------------------------ shared math ----------------------------------
def _ln(x, g, b):
    mean = jnp.mean(x, axis=-1, keepdims=True)
    var = jnp.mean((x - mean) ** 2, axis=-1, keepdims=True)
    return (x - mean) * jax.lax.rsqrt(var + LN_EPS) * g + b


def _gelu(x):
    # TODO(synk): torch.nn.GELU / HF BERT default is the erf-based GELU; tanh approx differs ~1e-3.
    c = math.sqrt(2.0 / math.pi)
    return 0.5 * x * (1.0 + jnp.tanh(c * (x + 0.044715 * x * x * x)))


# ------------------------------- fused kernel --------------------------------
def fused_bert_kernel(emb_ref, mask_ref, wslab_ref, vslab_ref, misc_ref, out_ref):
    # Activations (B*S, H) = (16, 32): batch folded into sublanes, resident for whole forward.
    x = _ln(emb_ref[...],
            misc_ref[HIDDEN + 1:HIDDEN + 2, 0:HIDDEN],   # embedding LN gamma
            misc_ref[HIDDEN + 2:HIDDEN + 3, 0:HIDDEN])   # embedding LN beta

    # Additive mask broadcast ONCE (not per layer / per head), head-major to match q/k/v stacking.
    add_mask = mask_ref[...]                                            # (B, S)
    m3 = jnp.broadcast_to(add_mask[:, None, :], (BATCH, SEQ, SEQ))      # (B, S, S)
    mask_full = jnp.concatenate([m3] * NUM_HEADS, axis=0)               # (H*B, S, S)

    for l in range(NUM_LAYERS):  # static unroll; fine at L=2 (use fori_loop if L grows)
        # Slices out of the packed per-layer slabs (sublane offsets are 8-aligned; only the
        # wo block sits at a nonzero lane offset -> one cheap lane rotate per layer).
        wqkv = wslab_ref[l, 0:HIDDEN, 0:3 * HIDDEN]                     # Q cols pre-scaled
        wo = wslab_ref[l, 0:HIDDEN, 3 * HIDDEN:4 * HIDDEN]
        w1 = wslab_ref[l, HIDDEN:2 * HIDDEN, 0:FFN]
        w2 = wslab_ref[l, 2 * HIDDEN:2 * HIDDEN + FFN, 0:HIDDEN]
        bqkv = vslab_ref[l, 0:1, 0:3 * HIDDEN]
        bo = vslab_ref[l, 1:2, 0:HIDDEN]
        b1 = vslab_ref[l, 2:3, 0:FFN]
        b2 = vslab_ref[l, 3:4, 0:HIDDEN]
        ln1_g = vslab_ref[l, 4:5, 0:HIDDEN]
        ln1_b = vslab_ref[l, 5:6, 0:HIDDEN]
        ln2_g = vslab_ref[l, 6:7, 0:HIDDEN]
        ln2_b = vslab_ref[l, 7:8, 0:HIDDEN]

        # Fused QKV projection: one (16,32) x (32,96) MXU matmul (score scale folded into Q).
        qkv = jnp.dot(x, wqkv, preferred_element_type=jnp.float32) + bqkv

        # Stack heads into the batch axis (head-major) via free outer-dim reshapes/concats.
        def heads(off):
            return jnp.concatenate(
                [qkv[:, off + h * HEAD_DIM: off + (h + 1) * HEAD_DIM
                     ].reshape(BATCH, SEQ, HEAD_DIM) for h in range(NUM_HEADS)], axis=0)

        q = heads(0)                 # (H*B, S, d), already scaled by 1/sqrt(d)
        k = heads(HIDDEN)
        v = heads(2 * HIDDEN)

        # One batched score matmul + one batched context matmul per layer.
        s = jnp.einsum("nqd,nkd->nqk", q, k,
                       preferred_element_type=jnp.float32) + mask_full
        m = jnp.max(s, axis=-1, keepdims=True)
        p = jnp.exp(s - m)
        p = p * pl.reciprocal(jnp.sum(p, axis=-1, keepdims=True), approx=True)
        ctx = jnp.einsum("nqk,nkd->nqd", p, v,
                         preferred_element_type=jnp.float32)            # (H*B, S, d)

        # Concatenate heads back to (B*S, H) and apply one attention-output projection.
        ctx_all = jnp.concatenate(
            [ctx[h * BATCH:(h + 1) * BATCH].reshape(BATCH * SEQ, HEAD_DIM)
             for h in range(NUM_HEADS)], axis=-1)
        attn = jnp.dot(ctx_all, wo, preferred_element_type=jnp.float32) + bo
        h1 = _ln(x + attn, ln1_g, ln1_b)

        ff = _gelu(jnp.dot(h1, w1, preferred_element_type=jnp.float32) + b1)
        ff = jnp.dot(ff, w2, preferred_element_type=jnp.float32) + b2
        x = _ln(h1 + ff, ln2_g, ln2_b)

    # Classifier on ALL 16 rows (same single MXU push as 2 rows) -> lane-dense, tile-aligned
    # (16, 128) unmasked store; wrapper slices rows [::SEQ] and lanes [:NUM_LABELS].
    out_ref[...] = (jnp.dot(x, misc_ref[0:HIDDEN, :], preferred_element_type=jnp.float32)
                    + misc_ref[HIDDEN:HIDDEN + 1, :])


# ------------------------------- parameters ----------------------------------
def init_params(key):
    """Raw (torch-like) parameters; used by the pure-JAX reference."""
    keys = iter(jax.random.split(key, 16))
    nrm = lambda shape: jax.random.normal(next(keys), shape, jnp.float32) * 0.02
    L = NUM_LAYERS
    return {
        "word_emb": nrm((VOCAB, HIDDEN)),
        "pos_emb": nrm((MAX_POS, HIDDEN)),
        "type_emb": nrm((2, HIDDEN)),
        "emb_ln_g": jnp.ones((1, HIDDEN), jnp.float32),
        "emb_ln_b": jnp.zeros((1, HIDDEN), jnp.float32),
        "wqkv": nrm((L, HIDDEN, 3 * HIDDEN)),
        "bqkv": jnp.zeros((L, 1, 3 * HIDDEN), jnp.float32),
        "wo": nrm((L, HIDDEN, HIDDEN)),
        "bo": jnp.zeros((L, 1, HIDDEN), jnp.float32),
        "ln1_g": jnp.ones((L, 1, HIDDEN), jnp.float32),
        "ln1_b": jnp.zeros((L, 1, HIDDEN), jnp.float32),
        "w1": nrm((L, HIDDEN, FFN)),
        "b1": jnp.zeros((L, 1, FFN), jnp.float32),
        "w2": nrm((L, FFN, HIDDEN)),
        "b2": jnp.zeros((L, 1, HIDDEN), jnp.float32),
        "ln2_g": jnp.ones((L, 1, HIDDEN), jnp.float32),
        "ln2_b": jnp.zeros((L, 1, HIDDEN), jnp.float32),
        "cls_w": nrm((HIDDEN, NUM_LABELS)),
        "cls_b": jnp.zeros((1, NUM_LABELS), jnp.float32),
    }


def pack_params(p):
    """One-time packing of raw params into the 3 lane-dense kernel slabs (hoisted out of the
    per-call wrapper). Also folds the 1/sqrt(HEAD_DIM) score scale into the Q columns."""
    L = NUM_LAYERS
    scale = 1.0 / math.sqrt(HEAD_DIM)
    wqkv = p["wqkv"].at[:, :, 0:HIDDEN].multiply(scale)
    bqkv = p["bqkv"].at[:, :, 0:HIDDEN].multiply(scale)

    # (L, 128, 128): rows 0:32 = [wqkv | wo], rows 32:64 = w1, rows 64:128 = w2.
    wslab = jnp.zeros((L, 2 * HIDDEN + FFN, 4 * HIDDEN), jnp.float32)
    wslab = wslab.at[:, 0:HIDDEN, 0:3 * HIDDEN].set(wqkv)
    wslab = wslab.at[:, 0:HIDDEN, 3 * HIDDEN:4 * HIDDEN].set(p["wo"])
    wslab = wslab.at[:, HIDDEN:2 * HIDDEN, 0:FFN].set(p["w1"])
    wslab = wslab.at[:, 2 * HIDDEN:2 * HIDDEN + FFN, 0:HIDDEN].set(p["w2"])

    # (L, 8, 128): one vector per sublane row, all at lane offset 0.
    vslab = jnp.zeros((L, 8, 4 * HIDDEN), jnp.float32)
    vslab = vslab.at[:, 0, 0:3 * HIDDEN].set(bqkv[:, 0, :])
    vslab = vslab.at[:, 1, 0:HIDDEN].set(p["bo"][:, 0, :])
    vslab = vslab.at[:, 2, 0:FFN].set(p["b1"][:, 0, :])
    vslab = vslab.at[:, 3, 0:HIDDEN].set(p["b2"][:, 0, :])
    vslab = vslab.at[:, 4, 0:HIDDEN].set(p["ln1_g"][:, 0, :])
    vslab = vslab.at[:, 5, 0:HIDDEN].set(p["ln1_b"][:, 0, :])
    vslab = vslab.at[:, 6, 0:HIDDEN].set(p["ln2_g"][:, 0, :])
    vslab = vslab.at[:, 7, 0:HIDDEN].set(p["ln2_b"][:, 0, :])

    # (35, 128): padded classifier weights/bias + embedding LN gamma/beta.
    misc = jnp.zeros((HIDDEN + 3, CLS_PAD), jnp.float32)
    misc = misc.at[0:HIDDEN, 0:NUM_LABELS].set(p["cls_w"])
    misc = misc.at[HIDDEN, 0:NUM_LABELS].set(p["cls_b"][0])
    misc = misc.at[HIDDEN + 1, 0:HIDDEN].set(p["emb_ln_g"][0])
    misc = misc.at[HIDDEN + 2, 0:HIDDEN].set(p["emb_ln_b"][0])

    return {"wslab": wslab, "vslab": vslab, "misc": misc,
            "word_emb": p["word_emb"], "pos_emb": p["pos_emb"], "type_emb": p["type_emb"]}


# ------------------------------ forward passes --------------------------------
def bert_classifier_forward(packed, input_ids, attention_mask):
    """Pallas-backed forward: logits = classifier(bert(...).last_hidden_state[:, 0, :])."""
    B, S = input_ids.shape
    # Embedding gather = plain-JAX glue (no clean Pallas gather at this size).
    emb = (jnp.take(packed["word_emb"], input_ids, axis=0)
           + packed["pos_emb"][None, :S, :]
           + packed["type_emb"][0][None, None, :])          # token_type_ids assumed all-zero
    emb = emb.reshape(B * S, HIDDEN).astype(jnp.float32)      # fold batch into sublanes

    # Additive attention mask: 0 where attended, -1e9 where padded; (B, S), input-dependent.
    add_mask = (1.0 - attention_mask.astype(jnp.float32)) * -1e9

    logits_pad = pl.pallas_call(
        fused_bert_kernel,
        out_shape=jax.ShapeDtypeStruct((B * S, CLS_PAD), jnp.float32),
    )(emb, add_mask, packed["wslab"], packed["vslab"], packed["misc"])

    # CLS rows are b*SEQ; slice the lane-dense slab back to (B, NUM_LABELS) in the wrapper.
    return logits_pad[::SEQ, :NUM_LABELS]


def ref_forward(params, input_ids, attention_mask):
    """Pure-JAX reference with identical math on the RAW params (validates packing + scale fold)."""
    B, S = input_ids.shape
    x = (jnp.take(params["word_emb"], input_ids, axis=0)
         + params["pos_emb"][None, :S, :]
         + params["type_emb"][0][None, None, :])
    x = _ln(x, params["emb_ln_g"], params["emb_ln_b"])
    add_mask = (1.0 - attention_mask.astype(jnp.float32))[:, None, :] * -1e9

    for l in range(NUM_LAYERS):
        qkv = x @ params["wqkv"][l] + params["bqkv"][l]
        q = qkv[..., 0:HIDDEN]
        k = qkv[..., HIDDEN:2 * HIDDEN]
        v = qkv[..., 2 * HIDDEN:3 * HIDDEN]
        attn = jnp.zeros_like(x)
        for h in range(NUM_HEADS):
            lo, hi = h * HEAD_DIM, (h + 1) * HEAD_DIM
            sc = (jnp.einsum("bsd,btd->bst", q[..., lo:hi], k[..., lo:hi])
                  / math.sqrt(HEAD_DIM) + add_mask)
            p = jax.nn.softmax(sc, axis=-1)
            attn = attn + jnp.einsum("bst,btd->bsd", p, v[..., lo:hi]) @ params["wo"][l][lo:hi, :]
        attn = attn + params["bo"][l]
        h1 = _ln(x + attn, params["ln1_g"][l], params["ln1_b"][l])
        ff = _gelu(h1 @ params["w1"][l] + params["b1"][l]) @ params["w2"][l] + params["b2"][l]
        x = _ln(h1 + ff, params["ln2_g"][l], params["ln2_b"][l])

    cls = x[:, 0, :]
    return cls @ params["cls_w"] + params["cls_b"]


# ----------------------------------- main -------------------------------------
if __name__ == "__main__":
    key = jax.random.PRNGKey(0)
    k_params, k_ids = jax.random.split(key, 2)

    params = init_params(k_params)
    packed = pack_params(params)   # one-time parameter packing (outside the per-call path)

    input_ids = jax.random.randint(k_ids, (BATCH, SEQ), 0, VOCAB, dtype=jnp.int32)
    # attention mask: first batch fully attended, second batch has trailing padding
    attention_mask = jnp.stack([
        jnp.ones((SEQ,), jnp.int32),
        jnp.concatenate([jnp.ones((SEQ - 3,), jnp.int32), jnp.zeros((3,), jnp.int32)]),
    ])

    forward = jax.jit(bert_classifier_forward)
    logits = jax.block_until_ready(forward(packed, input_ids, attention_mask))

    ref = ref_forward(params, input_ids, attention_mask)
    assert logits.shape == (BATCH, NUM_LABELS)
    assert jnp.allclose(logits, ref, rtol=1e-3, atol=1e-3), (logits, ref)

    print("KERNEL_OK")
</pallas_src>

<mosaic_0001>
module attributes {stable_mosaic.version = 11 : i64} {
  func.func @fused_bert_kernel(%arg0: memref<16x32xf32, #tpu.memory_space<vmem>>, %arg1: memref<2x8xf32, #tpu.memory_space<vmem>>, %arg2: memref<2x128x128xf32, #tpu.memory_space<vmem>>, %arg3: memref<2x8x128xf32, #tpu.memory_space<vmem>>, %arg4: memref<35x128xf32, #tpu.memory_space<vmem>>, %arg5: memref<16x128xf32, #tpu.memory_space<vmem>>) attributes {dimension_semantics = [], scalar_prefetch = 0 : i64, scratch_operands = 0 : i64, tpu.core_type = #tpu.core_type<tc>} {
    %c0 = arith.constant 0 : index
    %c0_0 = arith.constant 0 : index
    %0 = vector.load %arg0[%c0, %c0_0] : memref<16x32xf32, #tpu.memory_space<vmem>>, vector<16x32xf32>
    %c33 = arith.constant 33 : index
    %c0_1 = arith.constant 0 : index
    %1 = vector.load %arg4[%c33, %c0_1] : memref<35x128xf32, #tpu.memory_space<vmem>>, vector<1x32xf32>
    %c34 = arith.constant 34 : index
    %c0_2 = arith.constant 0 : index
    %2 = vector.load %arg4[%c34, %c0_2] : memref<35x128xf32, #tpu.memory_space<vmem>>, vector<1x32xf32>
    %cst = arith.constant dense<0.000000e+00> : vector<16xf32>
    %3 = vector.multi_reduction <add>, %0, %cst [1] : vector<16x32xf32> to vector<16xf32>
    %4 = vector.shape_cast %3 : vector<16xf32> to vector<16x1xf32>
    %cst_3 = arith.constant 3.200000e+01 : f32
    %5 = vector.broadcast %cst_3 : f32 to vector<16x1xf32>
    %6 = arith.divf %4, %5 : vector<16x1xf32>
    %7 = vector.broadcast %6 : vector<16x1xf32> to vector<16x32xf32>
    %8 = arith.subf %0, %7 : vector<16x32xf32>
    %9 = arith.mulf %8, %8 : vector<16x32xf32>
    %cst_4 = arith.constant dense<0.000000e+00> : vector<16xf32>
    %10 = vector.multi_reduction <add>, %9, %cst_4 [1] : vector<16x32xf32> to vector<16xf32>
    %11 = vector.shape_cast %10 : vector<16xf32> to vector<16x1xf32>
    %cst_5 = arith.constant 3.200000e+01 : f32
    %12 = vector.broadcast %cst_5 : f32 to vector<16x1xf32>
    %13 = arith.divf %11, %12 : vector<16x1xf32>
    %14 = vector.broadcast %6 : vector<16x1xf32> to vector<16x32xf32>
    %15 = arith.subf %0, %14 : vector<16x32xf32>
    %cst_6 = arith.constant 9.99999996E-13 : f32
    %16 = vector.broadcast %cst_6 : f32 to vector<16x1xf32>
    %17 = arith.addf %13, %16 : vector<16x1xf32>
    %18 = math.rsqrt %17 : vector<16x1xf32>
    %19 = vector.broadcast %18 : vector<16x1xf32> to vector<16x32xf32>
    %20 = arith.mulf %15, %19 : vector<16x32xf32>
    %21 = vector.broadcast %1 : vector<1x32xf32> to vector<16x32xf32>
    %22 = arith.mulf %20, %21 : vector<16x32xf32>
    %23 = vector.broadcast %2 : vector<1x32xf32> to vector<16x32xf32>
    %24 = arith.addf %22, %23 : vector<16x32xf32>
    %c0_7 = arith.constant 0 : index
    %c0_8 = arith.constant 0 : index
    %25 = vector.load %arg1[%c0_7, %c0_8] : memref<2x8xf32, #tpu.memory_space<vmem>>, vector<2x8xf32>
    %26 = vector.shape_cast %25 : vector<2x8xf32> to vector<2x1x8xf32>
    %27 = vector.shape_cast %26 : vector<2x1x8xf32> to vector<2x1x8xf32>
    %28 = vector.broadcast %27 : vector<2x1x8xf32> to vector<2x8x8xf32>
    %29 = tpu.concatenate %28, %28 in 0 : vector<2x8x8xf32>, vector<2x8x8xf32> -> vector<4x8x8xf32>
    %c0_9 = arith.constant 0 : index
    %c0_10 = arith.constant 0 : index
    %c0_11 = arith.constant 0 : index
    %30 = vector.load %arg2[%c0_9, %c0_10, %c0_11] : memref<2x128x128xf32, #tpu.memory_space<vmem>>, vector<1x32x96xf32>
    %31 = vector.shape_cast %30 : vector<1x32x96xf32> to vector<32x96xf32>
    %c0_12 = arith.constant 0 : index
    %c0_13 = arith.constant 0 : index
    %c96 = arith.constant 96 : index
    %32 = vector.load %arg2[%c0_12, %c0_13, %c96] : memref<2x128x128xf32, #tpu.memory_space<vmem>>, vector<1x32x32xf32>
    %33 = vector.shape_cast %32 : vector<1x32x32xf32> to vector<32x32xf32>
    %c0_14 = arith.constant 0 : index
    %c32 = arith.constant 32 : index
    %c0_15 = arith.constant 0 : index
    %34 = vector.load %arg2[%c0_14, %c32, %c0_15] : memref<2x128x128xf32, #tpu.memory_space<vmem>>, vector<1x32x64xf32>
    %35 = vector.shape_cast %34 : vector<1x32x64xf32> to vector<32x64xf32>
    %c0_16 = arith.constant 0 : index
    %c64 = arith.constant 64 : index
    %c0_17 = arith.constant 0 : index
    %36 = vector.load %arg2[%c0_16, %c64, %c0_17] : memref<2x128x128xf32, #tpu.memory_space<vmem>>, vector<1x64x32xf32>
    %37 = vector.shape_cast %36 : vector<1x64x32xf32> to vector<64x32xf32>
    %c0_18 = arith.constant 0 : index
    %c0_19 = arith.constant 0 : index
    %c0_20 = arith.constant 0 : index
    %38 = vector.load %arg3[%c0_18, %c0_19, %c0_20] : memref<2x8x128xf32, #tpu.memory_space<vmem>>, vector<1x1x96xf32>
    %39 = vector.shape_cast %38 : vector<1x1x96xf32> to vector<1x96xf32>
    %c0_21 = arith.constant 0 : index
    %c1 = arith.constant 1 : index
    %c0_22 = arith.constant 0 : index
    %40 = vector.load %arg3[%c0_21, %c1, %c0_22] : memref<2x8x128xf32, #tpu.memory_space<vmem>>, vector<1x1x32xf32>
    %41 = vector.shape_cast %40 : vector<1x1x32xf32> to vector<1x32xf32>
    %c0_23 = arith.constant 0 : index
    %c2 = arith.constant 2 : index
    %c0_24 = arith.constant 0 : index
    %42 = vector.load %arg3[%c0_23, %c2, %c0_24] : memref<2x8x128xf32, #tpu.memory_space<vmem>>, vector<1x1x64xf32>
    %43 = vector.shape_cast %42 : vector<1x1x64xf32> to vector<1x64xf32>
    %c0_25 = arith.constant 0 : index
    %c3 = arith.constant 3 : index
    %c0_26 = arith.constant 0 : index
    %44 = vector.load %arg3[%c0_25, %c3, %c0_26] : memref<2x8x128xf32, #tpu.memory_space<vmem>>, vector<1x1x32xf32>
    %45 = vector.shape_cast %44 : vector<1x1x32xf32> to vector<1x32xf32>
    %c0_27 = arith.constant 0 : index
    %c4 = arith.constant 4 : index
    %c0_28 = arith.constant 0 : index
    %46 = vector.load %arg3[%c0_27, %c4, %c0_28] : memref<2x8x128xf32, #tpu.memory_space<vmem>>, vector<1x1x32xf32>
    %47 = vector.shape_cast %46 : vector<1x1x32xf32> to vector<1x32xf32>
    %c0_29 = arith.constant 0 : index
    %c5 = arith.constant 5 : index
    %c0_30 = arith.constant 0 : index
    %48 = vector.load %arg3[%c0_29, %c5, %c0_30] : memref<2x8x128xf32, #tpu.memory_space<vmem>>, vector<1x1x32xf32>
    %49 = vector.shape_cast %48 : vector<1x1x32xf32> to vector<1x32xf32>
    %c0_31 = arith.constant 0 : index
    %c6 = arith.constant 6 : index
    %c0_32 = arith.constant 0 : index
    %50 = vector.load %arg3[%c0_31, %c6, %c0_32] : memref<2x8x128xf32, #tpu.memory_space<vmem>>, vector<1x1x32xf32>
    %51 = vector.shape_cast %50 : vector<1x1x32xf32> to vector<1x32xf32>
    %c0_33 = arith.constant 0 : index
    %c7 = arith.constant 7 : index
    %c0_34 = arith.constant 0 : index
    %52 = vector.load %arg3[%c0_33, %c7, %c0_34] : memref<2x8x128xf32, #tpu.memory_space<vmem>>, vector<1x1x32xf32>
    %53 = vector.shape_cast %52 : vector<1x1x32xf32> to vector<1x32xf32>
    %cst_35 = arith.constant dense<0.000000e+00> : vector<16x96xf32>
    %54 = tpu.matmul %24, %31, %cst_35 {dimension_numbers = #tpu.dot_dimension_numbers<[1], [0], [0], [1], [0, 0, 1, 1], [], []>} : vector<16x32xf32>, vector<32x96xf32>, vector<16x96xf32> -> vector<16x96xf32>
    %55 = vector.broadcast %39 : vector<1x96xf32> to vector<16x96xf32>
    %56 = arith.addf %54, %55 : vector<16x96xf32>
    %57 = vector.extract_strided_slice %56 {offsets = [0, 0], sizes = [16, 16], strides = [1, 1]} : vector<16x96xf32> to vector<16x16xf32>
    %58 = vector.shape_cast %57 : vector<16x16xf32> to vector<2x8x16xf32>
    %59 = vector.extract_strided_slice %56 {offsets = [0, 16], sizes = [16, 16], strides = [1, 1]} : vector<16x96xf32> to vector<16x16xf32>
    %60 = vector.shape_cast %59 : vector<16x16xf32> to vector<2x8x16xf32>
    %61 = tpu.concatenate %58, %60 in 0 : vector<2x8x16xf32>, vector<2x8x16xf32> -> vector<4x8x16xf32>
    %62 = vector.extract_strided_slice %56 {offsets = [0, 32], sizes = [16, 16], strides = [1, 1]} : vector<16x96xf32> to vector<16x16xf32>
    %63 = vector.shape_cast %62 : vector<16x16xf32> to vector<2x8x16xf32>
    %64 = vector.extract_strided_slice %56 {offsets = [0, 48], sizes = [16, 16], strides = [1, 1]} : vector<16x96xf32> to vector<16x16xf32>
    %65 = vector.shape_cast %64 : vector<16x16xf32> to vector<2x8x16xf32>
    %66 = tpu.concatenate %63, %65 in 0 : vector<2x8x16xf32>, vector<2x8x16xf32> -> vector<4x8x16xf32>
    %67 = vector.extract_strided_slice %56 {offsets = [0, 64], sizes = [16, 16], strides = [1, 1]} : vector<16x96xf32> to vector<16x16xf32>
    %68 = vector.shape_cast %67 : vector<16x16xf32> to vector<2x8x16xf32>
    %69 = vector.extract_strided_slice %56 {offsets = [0, 80], sizes = [16, 16], strides = [1, 1]} : vector<16x96xf32> to vector<16x16xf32>
    %70 = vector.shape_cast %69 : vector<16x16xf32> to vector<2x8x16xf32>
    %71 = tpu.concatenate %68, %70 in 0 : vector<2x8x16xf32>, vector<2x8x16xf32> -> vector<4x8x16xf32>
    "tpu.trace_start"() <{level = 10 : i32, message = "nqd,nkd->nqk"}> : () -> ()
    %cst_36 = arith.constant dense<0.000000e+00> : vector<4x8x8xf32>
    %72 = tpu.matmul %61, %66, %cst_36 {dimension_numbers = #tpu.dot_dimension_numbers<[2], [2], [1], [1], [0, 0, 0, 1, 1, 1], [0], [0]>} : vector<4x8x16xf32>, vector<4x8x16xf32>, vector<4x8x8xf32> -> vector<4x8x8xf32>
    "tpu.trace_stop"() : () -> ()
    %73 = arith.addf %72, %29 : vector<4x8x8xf32>
    %cst_37 = arith.constant dense<0xFF800000> : vector<4x8xf32>
    %74 = vector.multi_reduction <maximumf>, %73, %cst_37 [2] : vector<4x8x8xf32> to vector<4x8xf32>
    %75 = vector.shape_cast %74 : vector<4x8xf32> to vector<4x8x1xf32>
    %76 = vector.broadcast %75 : vector<4x8x1xf32> to vector<4x8x8xf32>
    %77 = arith.subf %73, %76 : vector<4x8x8xf32>
    %78 = math.exp %77 : vector<4x8x8xf32>
    %cst_38 = arith.constant dense<0.000000e+00> : vector<4x8xf32>
    %79 = vector.multi_reduction <add>, %78, %cst_38 [2] : vector<4x8x8xf32> to vector<4x8xf32>
    %80 = vector.shape_cast %79 : vector<4x8xf32> to vector<4x8x1xf32>
    %81 = tpu.reciprocal %80 {approx = true} : vector<4x8x1xf32> -> vector<4x8x1xf32>
    %82 = vector.broadcast %81 : vector<4x8x1xf32> to vector<4x8x8xf32>
    %83 = arith.mulf %78, %82 : vector<4x8x8xf32>
    "tpu.trace_start"() <{level = 10 : i32, message = "nqk,nkd->nqd"}> : () -> ()
    %cst_39 = arith.constant dense<0.000000e+00> : vector<4x8x16xf32>
    %84 = tpu.matmul %83, %71, %cst_39 {dimension_numbers = #tpu.dot_dimension_numbers<[2], [1], [1], [2], [0, 0, 0, 1, 1, 2], [0], [0]>} : vector<4x8x8xf32>, vector<4x8x16xf32>, vector<4x8x16xf32> -> vector<4x8x16xf32>
    "tpu.trace_stop"() : () -> ()
    %85 = vector.extract_strided_slice %84 {offsets = [0, 0, 0], sizes = [2, 8, 16], strides = [1, 1, 1]} : vector<4x8x16xf32> to vector<2x8x16xf32>
    %86 = vector.shape_cast %85 : vector<2x8x16xf32> to vector<16x16xf32>
    %87 = vector.extract_strided_slice %84 {offsets = [2, 0, 0], sizes = [2, 8, 16], strides = [1, 1, 1]} : vector<4x8x16xf32> to vector<2x8x16xf32>
    %88 = vector.shape_cast %87 : vector<2x8x16xf32> to vector<16x16xf32>
    %89 = tpu.concatenate %86, %88 in 1 : vector<16x16xf32>, vector<16x16xf32> -> vector<16x32xf32>
    %cst_40 = arith.constant dense<0.000000e+00> : vector<16x32xf32>
    %90 = tpu.matmul %89, %33, %cst_40 {dimension_numbers = #tpu.dot_dimension_numbers<[1], [0], [0], [1], [0, 0, 1, 1], [], []>} : vector<16x32xf32>, vector<32x32xf32>, vector<16x32xf32> -> vector<16x32xf32>
    %91 = vector.broadcast %41 : vector<1x32xf32> to vector<16x32xf32>
    %92 = arith.addf %90, %91 : vector<16x32xf32>
    %93 = arith.addf %24, %92 : vector<16x32xf32>
    %cst_41 = arith.constant dense<0.000000e+00> : vector<16xf32>
    %94 = vector.multi_reduction <add>, %93, %cst_41 [1] : vector<16x32xf32> to vector<16xf32>
    %95 = vector.shape_cast %94 : vector<16xf32> to vector<16x1xf32>
    %cst_42 = arith.constant 3.200000e+01 : f32
    %96 = vector.broadcast %cst_42 : f32 to vector<16x1xf32>
    %97 = arith.divf %95, %96 : vector<16x1xf32>
    %98 = vector.broadcast %97 : vector<16x1xf32> to vector<16x32xf32>
    %99 = arith.subf %93, %98 : vector<16x32xf32>
    %100 = arith.mulf %99, %99 : vector<16x32xf32>
    %cst_43 = arith.constant dense<0.000000e+00> : vector<16xf32>
    %101 = vector.multi_reduction <add>, %100, %cst_43 [1] : vector<16x32xf32> to vector<16xf32>
    %102 = vector.shape_cast %101 : vector<16xf32> to vector<16x1xf32>
    %cst_44 = arith.constant 3.200000e+01 : f32
    %103 = vector.broadcast %cst_44 : f32 to vector<16x1xf32>
    %104 = arith.divf %102, %103 : vector<16x1xf32>
    %105 = vector.broadcast %97 : vector<16x1xf32> to vector<16x32xf32>
    %106 = arith.subf %93, %105 : vector<16x32xf32>
    %cst_45 = arith.constant 9.99999996E-13 : f32
    %107 = vector.broadcast %cst_45 : f32 to vector<16x1xf32>
    %108 = arith.addf %104, %107 : vector<16x1xf32>
    %109 = math.rsqrt %108 : vector<16x1xf32>
    %110 = vector.broadcast %109 : vector<16x1xf32> to vector<16x32xf32>
    %111 = arith.mulf %106, %110 : vector<16x32xf32>
    %112 = vector.broadcast %47 : vector<1x32xf32> to vector<16x32xf32>
    %113 = arith.mulf %111, %112 : vector<16x32xf32>
    %114 = vector.broadcast %49 : vector<1x32xf32> to vector<16x32xf32>
    %115 = arith.addf %113, %114 : vector<16x32xf32>
    %cst_46 = arith.constant dense<0.000000e+00> : vector<16x64xf32>
    %116 = tpu.matmul %115, %35, %cst_46 {dimension_numbers = #tpu.dot_dimension_numbers<[1], [0], [0], [1], [0, 0, 1, 1], [], []>} : vector<16x32xf32>, vector<32x64xf32>, vector<16x64xf32> -> vector<16x64xf32>
    %117 = vector.broadcast %43 : vector<1x64xf32> to vector<16x64xf32>
    %118 = arith.addf %116, %117 : vector<16x64xf32>
    %cst_47 = arith.constant 5.000000e-01 : f32
    %119 = vector.broadcast %cst_47 : f32 to vector<16x64xf32>
    %120 = arith.mulf %119, %118 : vector<16x64xf32>
    %cst_48 = arith.constant 4.471500e-02 : f32
    %121 = vector.broadcast %cst_48 : f32 to vector<16x64xf32>
    %122 = arith.mulf %121, %118 : vector<16x64xf32>
    %123 = arith.mulf %122, %118 : vector<16x64xf32>
    %124 = arith.mulf %123, %118 : vector<16x64xf32>
    %125 = arith.addf %118, %124 : vector<16x64xf32>
    %cst_49 = arith.constant 0.797884583 : f32
    %126 = vector.broadcast %cst_49 : f32 to vector<16x64xf32>
    %127 = arith.mulf %126, %125 : vector<16x64xf32>
    %128 = math.tanh %127 : vector<16x64xf32>
    %cst_50 = arith.constant 1.000000e+00 : f32
    %129 = vector.broadcast %cst_50 : f32 to vector<16x64xf32>
    %130 = arith.addf %129, %128 : vector<16x64xf32>
    %131 = arith.mulf %120, %130 : vector<16x64xf32>
    %cst_51 = arith.constant dense<0.000000e+00> : vector<16x32xf32>
    %132 = tpu.matmul %131, %37, %cst_51 {dimension_numbers = #tpu.dot_dimension_numbers<[1], [0], [0], [1], [0, 0, 1, 1], [], []>} : vector<16x64xf32>, vector<64x32xf32>, vector<16x32xf32> -> vector<16x32xf32>
    %133 = vector.broadcast %45 : vector<1x32xf32> to vector<16x32xf32>
    %134 = arith.addf %132, %133 : vector<16x32xf32>
    %135 = arith.addf %115, %134 : vector<16x32xf32>
    %cst_52 = arith.constant dense<0.000000e+00> : vector<16xf32>
    %136 = vector.multi_reduction <add>, %135, %cst_52 [1] : vector<16x32xf32> to vector<16xf32>
    %137 = vector.shape_cast %136 : vector<16xf32> to vector<16x1xf32>
    %cst_53 = arith.constant 3.200000e+01 : f32
    %138 = vector.broadcast %cst_53 : f32 to vector<16x1xf32>
    %139 = arith.divf %137, %138 : vector<16x1xf32>
    %140 = vector.broadcast %139 : vector<16x1xf32> to vector<16x32xf32>
    %141 = arith.subf %135, %140 : vector<16x32xf32>
    %142 = arith.mulf %141, %141 : vector<16x32xf32>
    %cst_54 = arith.constant dense<0.000000e+00> : vector<16xf32>
    %143 = vector.multi_reduction <add>, %142, %cst_54 [1] : vector<16x32xf32> to vector<16xf32>
    %144 = vector.shape_cast %143 : vector<16xf32> to vector<16x1xf32>
    %cst_55 = arith.constant 3.200000e+01 : f32
    %145 = vector.broadcast %cst_55 : f32 to vector<16x1xf32>
    %146 = arith.divf %144, %145 : vector<16x1xf32>
    %147 = vector.broadcast %139 : vector<16x1xf32> to vector<16x32xf32>
    %148 = arith.subf %135, %147 : vector<16x32xf32>
    %cst_56 = arith.constant 9.99999996E-13 : f32
    %149 = vector.broadcast %cst_56 : f32 to vector<16x1xf32>
    %150 = arith.addf %146, %149 : vector<16x1xf32>
    %151 = math.rsqrt %150 : vector<16x1xf32>
    %152 = vector.broadcast %151 : vector<16x1xf32> to vector<16x32xf32>
    %153 = arith.mulf %148, %152 : vector<16x32xf32>
    %154 = vector.broadcast %51 : vector<1x32xf32> to vector<16x32xf32>
    %155 = arith.mulf %153, %154 : vector<16x32xf32>
    %156 = vector.broadcast %53 : vector<1x32xf32> to vector<16x32xf32>
    %157 = arith.addf %155, %156 : vector<16x32xf32>
    %c1_57 = arith.constant 1 : index
    %c0_58 = arith.constant 0 : index
    %c0_59 = arith.constant 0 : index
    %158 = vector.load %arg2[%c1_57, %c0_58, %c0_59] : memref<2x128x128xf32, #tpu.memory_space<vmem>>, vector<1x32x96xf32>
    %159 = vector.shape_cast %158 : vector<1x32x96xf32> to vector<32x96xf32>
    %c1_60 = arith.constant 1 : index
    %c0_61 = arith.constant 0 : index
    %c96_62 = arith.constant 96 : index
    %160 = vector.load %arg2[%c1_60, %c0_61, %c96_62] : memref<2x128x128xf32, #tpu.memory_space<vmem>>, vector<1x32x32xf32>
    %161 = vector.shape_cast %160 : vector<1x32x32xf32> to vector<32x32xf32>
    %c1_63 = arith.constant 1 : index
    %c32_64 = arith.constant 32 : index
    %c0_65 = arith.constant 0 : index
    %162 = vector.load %arg2[%c1_63, %c32_64, %c0_65] : memref<2x128x128xf32, #tpu.memory_space<vmem>>, vector<1x32x64xf32>
    %163 = vector.shape_cast %162 : vector<1x32x64xf32> to vector<32x64xf32>
    %c1_66 = arith.constant 1 : index
    %c64_67 = arith.constant 64 : index
    %c0_68 = arith.constant 0 : index
    %164 = vector.load %arg2[%c1_66, %c64_67, %c0_68] : memref<2x128x128xf32, #tpu.memory_space<vmem>>, vector<1x64x32xf32>
    %165 = vector.shape_cast %164 : vector<1x64x32xf32> to vector<64x32xf32>
    %c1_69 = arith.constant 1 : index
    %c0_70 = arith.constant 0 : index
    %c0_71 = arith.constant 0 : index
    %166 = vector.load %arg3[%c1_69, %c0_70, %c0_71] : memref<2x8x128xf32, #tpu.memory_space<vmem>>, vector<1x1x96xf32>
    %167 = vector.shape_cast %166 : vector<1x1x96xf32> to vector<1x96xf32>
    %c1_72 = arith.constant 1 : index
    %c1_73 = arith.constant 1 : index
    %c0_74 = arith.constant 0 : index
    %168 = vector.load %arg3[%c1_72, %c1_73, %c0_74] : memref<2x8x128xf32, #tpu.memory_space<vmem>>, vector<1x1x32xf32>
    %169 = vector.shape_cast %168 : vector<1x1x32xf32> to vector<1x32xf32>
    %c1_75 = arith.constant 1 : index
    %c2_76 = arith.constant 2 : index
    %c0_77 = arith.constant 0 : index
    %170 = vector.load %arg3[%c1_75, %c2_76, %c0_77] : memref<2x8x128xf32, #tpu.memory_space<vmem>>, vector<1x1x64xf32>
    %171 = vector.shape_cast %170 : vector<1x1x64xf32> to vector<1x64xf32>
    %c1_78 = arith.constant 1 : index
    %c3_79 = arith.constant 3 : index
    %c0_80 = arith.constant 0 : index
    %172 = vector.load %arg3[%c1_78, %c3_79, %c0_80] : memref<2x8x128xf32, #tpu.memory_space<vmem>>, vector<1x1x32xf32>
    %173 = vector.shape_cast %172 : vector<1x1x32xf32> to vector<1x32xf32>
    %c1_81 = arith.constant 1 : index
    %c4_82 = arith.constant 4 : index
    %c0_83 = arith.constant 0 : index
    %174 = vector.load %arg3[%c1_81, %c4_82, %c0_83] : memref<2x8x128xf32, #tpu.memory_space<vmem>>, vector<1x1x32xf32>
    %175 = vector.shape_cast %174 : vector<1x1x32xf32> to vector<1x32xf32>
    %c1_84 = arith.constant 1 : index
    %c5_85 = arith.constant 5 : index
    %c0_86 = arith.constant 0 : index
    %176 = vector.load %arg3[%c1_84, %c5_85, %c0_86] : memref<2x8x128xf32, #tpu.memory_space<vmem>>, vector<1x1x32xf32>
    %177 = vector.shape_cast %176 : vector<1x1x32xf32> to vector<1x32xf32>
    %c1_87 = arith.constant 1 : index
    %c6_88 = arith.constant 6 : index
    %c0_89 = arith.constant 0 : index
    %178 = vector.load %arg3[%c1_87, %c6_88, %c0_89] : memref<2x8x128xf32, #tpu.memory_space<vmem>>, vector<1x1x32xf32>
    %179 = vector.shape_cast %178 : vector<1x1x32xf32> to vector<1x32xf32>
    %c1_90 = arith.constant 1 : index
    %c7_91 = arith.constant 7 : index
    %c0_92 = arith.constant 0 : index
    %180 = vector.load %arg3[%c1_90, %c7_91, %c0_92] : memref<2x8x128xf32, #tpu.memory_space<vmem>>, vector<1x1x32xf32>
    %181 = vector.shape_cast %180 : vector<1x1x32xf32> to vector<1x32xf32>
    %cst_93 = arith.constant dense<0.000000e+00> : vector<16x96xf32>
    %182 = tpu.matmul %157, %159, %cst_93 {dimension_numbers = #tpu.dot_dimension_numbers<[1], [0], [0], [1], [0, 0, 1, 1], [], []>} : vector<16x32xf32>, vector<32x96xf32>, vector<16x96xf32> -> vector<16x96xf32>
    %183 = vector.broadcast %167 : vector<1x96xf32> to vector<16x96xf32>
    %184 = arith.addf %182, %183 : vector<16x96xf32>
    %185 = vector.extract_strided_slice %184 {offsets = [0, 0], sizes = [16, 16], strides = [1, 1]} : vector<16x96xf32> to vector<16x16xf32>
    %186 = vector.shape_cast %185 : vector<16x16xf32> to vector<2x8x16xf32>
    %187 = vector.extract_strided_slice %184 {offsets = [0, 16], sizes = [16, 16], strides = [1, 1]} : vector<16x96xf32> to vector<16x16xf32>
    %188 = vector.shape_cast %187 : vector<16x16xf32> to vector<2x8x16xf32>
    %189 = tpu.concatenate %186, %188 in 0 : vector<2x8x16xf32>, vector<2x8x16xf32> -> vector<4x8x16xf32>
    %190 = vector.extract_strided_slice %184 {offsets = [0, 32], sizes = [16, 16], strides = [1, 1]} : vector<16x96xf32> to vector<16x16xf32>
    %191 = vector.shape_cast %190 : vector<16x16xf32> to vector<2x8x16xf32>
    %192 = vector.extract_strided_slice %184 {offsets = [0, 48], sizes = [16, 16], strides = [1, 1]} : vector<16x96xf32> to vector<16x16xf32>
    %193 = vector.shape_cast %192 : vector<16x16xf32> to vector<2x8x16xf32>
    %194 = tpu.concatenate %191, %193 in 0 : vector<2x8x16xf32>, vector<2x8x16xf32> -> vector<4x8x16xf32>
    %195 = vector.extract_strided_slice %184 {offsets = [0, 64], sizes = [16, 16], strides = [1, 1]} : vector<16x96xf32> to vector<16x16xf32>
    %196 = vector.shape_cast %195 : vector<16x16xf32> to vector<2x8x16xf32>
    %197 = vector.extract_strided_slice %184 {offsets = [0, 80], sizes = [16, 16], strides = [1, 1]} : vector<16x96xf32> to vector<16x16xf32>
    %198 = vector.shape_cast %197 : vector<16x16xf32> to vector<2x8x16xf32>
    %199 = tpu.concatenate %196, %198 in 0 : vector<2x8x16xf32>, vector<2x8x16xf32> -> vector<4x8x16xf32>
    "tpu.trace_start"() <{level = 10 : i32, message = "nqd,nkd->nqk"}> : () -> ()
    %cst_94 = arith.constant dense<0.000000e+00> : vector<4x8x8xf32>
    %200 = tpu.matmul %189, %194, %cst_94 {dimension_numbers = #tpu.dot_dimension_numbers<[2], [2], [1], [1], [0, 0, 0, 1, 1, 1], [0], [0]>} : vector<4x8x16xf32>, vector<4x8x16xf32>, vector<4x8x8xf32> -> vector<4x8x8xf32>
    "tpu.trace_stop"() : () -> ()
    %201 = arith.addf %200, %29 : vector<4x8x8xf32>
    %cst_95 = arith.constant dense<0xFF800000> : vector<4x8xf32>
    %202 = vector.multi_reduction <maximumf>, %201, %cst_95 [2] : vector<4x8x8xf32> to vector<4x8xf32>
    %203 = vector.shape_cast %202 : vector<4x8xf32> to vector<4x8x1xf32>
    %204 = vector.broadcast %203 : vector<4x8x1xf32> to vector<4x8x8xf32>
    %205 = arith.subf %201, %204 : vector<4x8x8xf32>
    %206 = math.exp %205 : vector<4x8x8xf32>
    %cst_96 = arith.constant dense<0.000000e+00> : vector<4x8xf32>
    %207 = vector.multi_reduction <add>, %206, %cst_96 [2] : vector<4x8x8xf32> to vector<4x8xf32>
    %208 = vector.shape_cast %207 : vector<4x8xf32> to vector<4x8x1xf32>
    %209 = tpu.reciprocal %208 {approx = true} : vector<4x8x1xf32> -> vector<4x8x1xf32>
    %210 = vector.broadcast %209 : vector<4x8x1xf32> to vector<4x8x8xf32>
    %211 = arith.mulf %206, %210 : vector<4x8x8xf32>
    "tpu.trace_start"() <{level = 10 : i32, message = "nqk,nkd->nqd"}> : () -> ()
    %cst_97 = arith.constant dense<0.000000e+00> : vector<4x8x16xf32>
    %212 = tpu.matmul %211, %199, %cst_97 {dimension_numbers = #tpu.dot_dimension_numbers<[2], [1], [1], [2], [0, 0, 0, 1, 1, 2], [0], [0]>} : vector<4x8x8xf32>, vector<4x8x16xf32>, vector<4x8x16xf32> -> vector<4x8x16xf32>
    "tpu.trace_stop"() : () -> ()
    %213 = vector.extract_strided_slice %212 {offsets = [0, 0, 0], sizes = [2, 8, 16], strides = [1, 1, 1]} : vector<4x8x16xf32> to vector<2x8x16xf32>
    %214 = vector.shape_cast %213 : vector<2x8x16xf32> to vector<16x16xf32>
    %215 = vector.extract_strided_slice %212 {offsets = [2, 0, 0], sizes = [2, 8, 16], strides = [1, 1, 1]} : vector<4x8x16xf32> to vector<2x8x16xf32>
    %216 = vector.shape_cast %215 : vector<2x8x16xf32> to vector<16x16xf32>
    %217 = tpu.concatenate %214, %216 in 1 : vector<16x16xf32>, vector<16x16xf32> -> vector<16x32xf32>
    %cst_98 = arith.constant dense<0.000000e+00> : vector<16x32xf32>
    %218 = tpu.matmul %217, %161, %cst_98 {dimension_numbers = #tpu.dot_dimension_numbers<[1], [0], [0], [1], [0, 0, 1, 1], [], []>} : vector<16x32xf32>, vector<32x32xf32>, vector<16x32xf32> -> vector<16x32xf32>
    %219 = vector.broadcast %169 : vector<1x32xf32> to vector<16x32xf32>
    %220 = arith.addf %218, %219 : vector<16x32xf32>
    %221 = arith.addf %157, %220 : vector<16x32xf32>
    %cst_99 = arith.constant dense<0.000000e+00> : vector<16xf32>
    %222 = vector.multi_reduction <add>, %221, %cst_99 [1] : vector<16x32xf32> to vector<16xf32>
    %223 = vector.shape_cast %222 : vector<16xf32> to vector<16x1xf32>
    %cst_100 = arith.constant 3.200000e+01 : f32
    %224 = vector.broadcast %cst_100 : f32 to vector<16x1xf32>
    %225 = arith.divf %223, %224 : vector<16x1xf32>
    %226 = vector.broadcast %225 : vector<16x1xf32> to vector<16x32xf32>
    %227 = arith.subf %221, %226 : vector<16x32xf32>
    %228 = arith.mulf %227, %227 : vector<16x32xf32>
    %cst_101 = arith.constant dense<0.000000e+00> : vector<16xf32>
    %229 = vector.multi_reduction <add>, %228, %cst_101 [1] : vector<16x32xf32> to vector<16xf32>
    %230 = vector.shape_cast %229 : vector<16xf32> to vector<16x1xf32>
    %cst_102 = arith.constant 3.200000e+01 : f32
    %231 = vector.broadcast %cst_102 : f32 to vector<16x1xf32>
    %232 = arith.divf %230, %231 : vector<16x1xf32>
    %233 = vector.broadcast %225 : vector<16x1xf32> to vector<16x32xf32>
    %234 = arith.subf %221, %233 : vector<16x32xf32>
    %cst_103 = arith.constant 9.99999996E-13 : f32
    %235 = vector.broadcast %cst_103 : f32 to vector<16x1xf32>
    %236 = arith.addf %232, %235 : vector<16x1xf32>
    %237 = math.rsqrt %236 : vector<16x1xf32>
    %238 = vector.broadcast %237 : vector<16x1xf32> to vector<16x32xf32>
    %239 = arith.mulf %234, %238 : vector<16x32xf32>
    %240 = vector.broadcast %175 : vector<1x32xf32> to vector<16x32xf32>
    %241 = arith.mulf %239, %240 : vector<16x32xf32>
    %242 = vector.broadcast %177 : vector<1x32xf32> to vector<16x32xf32>
    %243 = arith.addf %241, %242 : vector<16x32xf32>
    %cst_104 = arith.constant dense<0.000000e+00> : vector<16x64xf32>
    %244 = tpu.matmul %243, %163, %cst_104 {dimension_numbers = #tpu.dot_dimension_numbers<[1], [0], [0], [1], [0, 0, 1, 1], [], []>} : vector<16x32xf32>, vector<32x64xf32>, vector<16x64xf32> -> vector<16x64xf32>
    %245 = vector.broadcast %171 : vector<1x64xf32> to vector<16x64xf32>
    %246 = arith.addf %244, %245 : vector<16x64xf32>
    %cst_105 = arith.constant 5.000000e-01 : f32
    %247 = vector.broadcast %cst_105 : f32 to vector<16x64xf32>
    %248 = arith.mulf %247, %246 : vector<16x64xf32>
    %cst_106 = arith.constant 4.471500e-02 : f32
    %249 = vector.broadcast %cst_106 : f32 to vector<16x64xf32>
    %250 = arith.mulf %249, %246 : vector<16x64xf32>
    %251 = arith.mulf %250, %246 : vector<16x64xf32>
    %252 = arith.mulf %251, %246 : vector<16x64xf32>
    %253 = arith.addf %246, %252 : vector<16x64xf32>
    %cst_107 = arith.constant 0.797884583 : f32
    %254 = vector.broadcast %cst_107 : f32 to vector<16x64xf32>
    %255 = arith.mulf %254, %253 : vector<16x64xf32>
    %256 = math.tanh %255 : vector<16x64xf32>
    %cst_108 = arith.constant 1.000000e+00 : f32
    %257 = vector.broadcast %cst_108 : f32 to vector<16x64xf32>
    %258 = arith.addf %257, %256 : vector<16x64xf32>
    %259 = arith.mulf %248, %258 : vector<16x64xf32>
    %cst_109 = arith.constant dense<0.000000e+00> : vector<16x32xf32>
    %260 = tpu.matmul %259, %165, %cst_109 {dimension_numbers = #tpu.dot_dimension_numbers<[1], [0], [0], [1], [0, 0, 1, 1], [], []>} : vector<16x64xf32>, vector<64x32xf32>, vector<16x32xf32> -> vector<16x32xf32>
    %261 = vector.broadcast %173 : vector<1x32xf32> to vector<16x32xf32>
    %262 = arith.addf %260, %261 : vector<16x32xf32>
    %263 = arith.addf %243, %262 : vector<16x32xf32>
    %cst_110 = arith.constant dense<0.000000e+00> : vector<16xf32>
    %264 = vector.multi_reduction <add>, %263, %cst_110 [1] : vector<16x32xf32> to vector<16xf32>
    %265 = vector.shape_cast %264 : vector<16xf32> to vector<16x1xf32>
    %cst_111 = arith.constant 3.200000e+01 : f32
    %266 = vector.broadcast %cst_111 : f32 to vector<16x1xf32>
    %267 = arith.divf %265, %266 : vector<16x1xf32>
    %268 = vector.broadcast %267 : vector<16x1xf32> to vector<16x32xf32>
    %269 = arith.subf %263, %268 : vector<16x32xf32>
    %270 = arith.mulf %269, %269 : vector<16x32xf32>
    %cst_112 = arith.constant dense<0.000000e+00> : vector<16xf32>
    %271 = vector.multi_reduction <add>, %270, %cst_112 [1] : vector<16x32xf32> to vector<16xf32>
    %272 = vector.shape_cast %271 : vector<16xf32> to vector<16x1xf32>
    %cst_113 = arith.constant 3.200000e+01 : f32
    %273 = vector.broadcast %cst_113 : f32 to vector<16x1xf32>
    %274 = arith.divf %272, %273 : vector<16x1xf32>
    %275 = vector.broadcast %267 : vector<16x1xf32> to vector<16x32xf32>
    %276 = arith.subf %263, %275 : vector<16x32xf32>
    %cst_114 = arith.constant 9.99999996E-13 : f32
    %277 = vector.broadcast %cst_114 : f32 to vector<16x1xf32>
    %278 = arith.addf %274, %277 : vector<16x1xf32>
    %279 = math.rsqrt %278 : vector<16x1xf32>
    %280 = vector.broadcast %279 : vector<16x1xf32> to vector<16x32xf32>
    %281 = arith.mulf %276, %280 : vector<16x32xf32>
    %282 = vector.broadcast %179 : vector<1x32xf32> to vector<16x32xf32>
    %283 = arith.mulf %281, %282 : vector<16x32xf32>
    %284 = vector.broadcast %181 : vector<1x32xf32> to vector<16x32xf32>
    %285 = arith.addf %283, %284 : vector<16x32xf32>
    %c0_115 = arith.constant 0 : index
    %c0_116 = arith.constant 0 : index
    %286 = vector.load %arg4[%c0_115, %c0_116] : memref<35x128xf32, #tpu.memory_space<vmem>>, vector<32x128xf32>
    %cst_117 = arith.constant dense<0.000000e+00> : vector<16x128xf32>
    %287 = tpu.matmul %285, %286, %cst_117 {dimension_numbers = #tpu.dot_dimension_numbers<[1], [0], [0], [1], [0, 0, 1, 1], [], []>} : vector<16x32xf32>, vector<32x128xf32>, vector<16x128xf32> -> vector<16x128xf32>
    %c32_118 = arith.constant 32 : index
    %c0_119 = arith.constant 0 : index
    %288 = vector.load %arg4[%c32_118, %c0_119] : memref<35x128xf32, #tpu.memory_space<vmem>>, vector<1x128xf32>
    %289 = vector.broadcast %288 : vector<1x128xf32> to vector<16x128xf32>
    %290 = arith.addf %287, %289 : vector<16x128xf32>
    %c0_120 = arith.constant 0 : index
    %c0_121 = arith.constant 0 : index
    %291 = vector.load %arg5[%c0_120, %c0_121] : memref<16x128xf32, #tpu.memory_space<vmem>>, vector<16x128xf32>
    tpu.vector_store %arg5[%c0_120, %c0_121], %290 {strides = array<i32>} : memref<16x128xf32, #tpu.memory_space<vmem>>, vector<16x128xf32>,
    return
  }
}

</mosaic_0001>

<bundles_post_ra>
// kernel: bert_classifier_forward.1
= control target key start
LH: loop header
LB: loop body
LE: loop exit
PB: predicated region body
PF: predicated region fallthrough
CT: control target
= control target key end

     0   :  { %vm24_vm0 = vcmask 261120   ;;  %v1413_v4 = vmov 32.0   ;;  %s1414_s10 = smov 96   ;;  %s1415_s11 = smov 112   ;;  %vm151_vm8 = vcmask 130048   ;;  %vm254_vm9 = vcmask 64512   ;;  %s1860_s0 = inlined_call_operand.vmem [shape: f32[16,32], index: 0, kind: input, shape index: {}]   ;;  %s1861_s4 = inlined_call_operand.vmem [shape: f32[35,128], index: 4, kind: input, shape index: {}]   ;;  %s1862_s3 = inlined_call_operand.vmem [shape: f32[2,8,128], index: 3, kind: input, shape index: {}]   ;;  %s1863_s2 = inlined_call_operand.vmem [shape: f32[2,128,128], index: 2, kind: input, shape index: {}]   ;;  %s1864_s1 = inlined_call_operand.vmem [shape: f32[2,8], index: 1, kind: input, shape index: {}]   ;;  %s1865_s5 = inlined_call_operand.vmem [shape: f32[16,128], index: 5, kind: output, shape index: {}]  }
   0x1   :  { %v20_v0 = vld [vmem:[%s1860_s0] sm:$0xff]  ;;  %v21_v2 = vld [vmem:[%s1860_s0 + $0x8] sm:$0xff]  ;;  %1351 = vrcp.f32 %v1413_v4  ;;  %v1466_v21 = vld [vmem:[%s1863_s2 + $0x18] sm:$0xff]  ;;  %s1417_s14 = smov 32   ;;  %s1418_s15 = smov 16  }
   0x2   :  { %v25_v1 = vsel %vm24_vm0, %v20_v0, 0.0  ;;  %v28_v3 = vsel %vm24_vm0, %v21_v2, 0.0  ;;  %132 = vmatpush.msra.mxu0 %v1466_v21  ;;  %v1472_v22 = vld [vmem:[%s1863_s2 + $0x10] sm:$0xff]  ;;  %v1478_v23 = vld [vmem:[%s1863_s2 + $0x8] sm:$0xff]  ;;  %v1484_v24 = vld [vmem:[%s1863_s2] sm:$0xff] }
   0x3   :  { %26 = vadd.xlane.f32.xlu0 %v25_v1  ;;  %v1312_v25 = vpack.i.bf16 %v1472_v22, %v1466_v21  ;;  %v1317_v26 = vpack.i.bf16 %v1484_v24, %v1478_v23  ;;  %v1332_v41 = vld [vmem:[%s1861_s4 + $0x21] ss:$0 sm:$0xff]  ;;  %v1333_v45 = vld [vmem:[%s1861_s4 + $0x22] ss:$0 sm:$0xff]  ;;  %v1334_v55 = vld [vmem:[%s1862_s3] ss:$0 sm:$0xff] }
   0x4   :  { %133 = vmatpush.msra.mxu0 %v1472_v22 }
   0x6   :  { %134 = vmatpush.msra.mxu0 %v1478_v23 }
   0x7   :  { %v1352_v5 = vpop.eup %1351 }
   0x8   :  { %v32_v6 = vmul.f32 32.0, %v1352_v5  ;;  %vm36_vm1 = vweird.f32 %v1352_v5  ;;  %135 = vmatpush.msra.mxu0 %v1484_v24 }
   0xa   :  { %v33_v7 = vsub.f32 1.0, %v32_v6 }
   0xb   :  { %29 = vadd.xlane.f32.xlu0 %v28_v3 }
   0xc   :  { %v34_v8 = vmul.f32 %v1352_v5, %v33_v7 }
   0xe   :  { %v35_v9 = vadd.f32 %v1352_v5, %v34_v8 }
  0x10   :  { %v1457_v10 = vsel %vm36_vm1, %v1352_v5, %v35_v9  ;;  %vm560_vm1 = vcmask 523264  }
  0x76   :  { %v27_v11 = vpop.xlane.xlu0 %26 }
  0x77   :  { %v38_v12 = vmul.f32 %v1457_v10, %v27_v11 }
  0x79   :  { %v40_v13 = vsub.f32 %v20_v0, %v38_v12 }
  0x7b   :  { %v42_v14 = vmul.f32 %v40_v13, %v40_v13 }
  0x7d   :  { %v44_v15 = vsel %vm24_vm0, %v42_v14, 0.0 }
  0x7e   :  { %45 = vadd.xlane.f32.xlu1 %v44_v15  ;;  %v30_v16 = vpop.xlane.xlu0 %29 }
  0x7f   :  { %v39_v17 = vmul.f32 %v1457_v10, %v30_v16 }
  0x81   :  { %v41_v18 = vsub.f32 %v21_v2, %v39_v17  ;;  %v82_v2 = vld [vmem:[%s1864_s1] sm:$0x3]  ;;  %s1416_s1 = smov 64  }
  0x82   :  { %v1540_v3 = vperm.slane %v82_v2, 0  ;;  %v84_v7 = vrot.slane %v82_v2, 1 }
  0x83   :  { %v43_v19 = vmul.f32 %v41_v18, %v41_v18 }
  0x84   :  { %v1544_v8 = vperm.slane %v84_v7, 0 }
  0x85   :  { %v47_v20 = vsel %vm24_vm0, %v43_v19, 0.0 }
  0x86   :  { %48 = vadd.xlane.f32.xlu1 %v47_v20 }
  0xf1   :  { %v46_v27 = vpop.xlane.xlu1 %45 }
  0xf2   :  { %v50_v28 = vmul.f32 %v46_v27, %v1457_v10 }
  0xf4   :  { %v52_v29 = vadd.f32 1e-12, %v50_v28 }
  0xf6   :  { %1353 = vrsqrt.f32 %v52_v29  ;;  %vm60_vm3 = vweird.f32 %v52_v29 }
  0xf9   :  { %v49_v30 = vpop.xlane.xlu1 %48 }
  0xfa   :  { %v51_v31 = vmul.f32 %v49_v30, %v1457_v10 }
  0xfc   :  { %v1354_v32 = vpop.eup %1353  ;;  %v53_v33 = vadd.f32 1e-12, %v51_v31 }
  0xfd   :  { %v55_v34 = vmul.f32 %v1354_v32, %v52_v29  ;;  %vm61_vm2 = vweird.f32 %v1354_v32 }
  0xfe   :  { %1355 = vrsqrt.f32 %v53_v33  ;;  %vm62_vm4 = vmor %vm60_vm3, %vm61_vm2  ;;  %vm70_vm5 = vweird.f32 %v53_v33 }
  0xff   :  { %v56_v35 = vmul.f32 %v1354_v32, %v55_v34 }
 0x101   :  { %v57_v36 = vmul.f32 0.5, %v56_v35 }
 0x103   :  { %v58_v37 = vsub.f32 1.5, %v57_v36 }
 0x104   :  { %v1356_v38 = vpop.eup %1355 }
 0x105   :  { %v59_v39 = vmul.f32 %v1354_v32, %v58_v37  ;;  %v65_v40 = vmul.f32 %v1356_v38, %v53_v33  ;;  %vm71_vm6 = vweird.f32 %v1356_v38 }
 0x106   :  { %vm72_vm7 = vmor %vm70_vm5, %vm71_vm6 }
 0x107   :  { %v63_v42 = vsel %vm62_vm4, %v1354_v32, %v59_v39  ;;  %v66_v43 = vmul.f32 %v1356_v38, %v65_v40 }
 0x108   :  { %v74_v44 = vmul.f32 %v63_v42, %v40_v13 }
 0x109   :  { %v67_v46 = vmul.f32 0.5, %v66_v43 }
 0x10a   :  { %v77_v47 = vmul.f32 %v1332_v41, %v74_v44 }
 0x10b   :  { %v68_v48 = vsub.f32 1.5, %v67_v46 }
 0x10c   :  { %v1499_v49 = vadd.f32 %v1333_v45, %v77_v47 }
 0x10d   :  { %v69_v50 = vmul.f32 %v1356_v38, %v68_v48 }
 0x10e   :  { %1235 = vmatmul.msk.f32.vlgmr.msra.gmra.mxu0 %vm24_vm0, %v1499_v49 }
 0x10f   :  { %v73_v51 = vsel %vm72_vm7, %v1356_v38, %v69_v50 }
 0x110   :  { %v75_v52 = vmul.f32 %v73_v51, %v41_v18 }
 0x112   :  { %v78_v53 = vmul.f32 %v1332_v41, %v75_v52 }
 0x114   :  { %v1503_v54 = vadd.f32 %v1333_v45, %v78_v53 }
 0x116   :  { %1236 = vmatmul.msk.f32.gmra.mxu0 %vm24_vm0, %v1503_v54 }
 0x18b   :  { %v137_v56 = vpop.f32.mrf.mxu0 }
 0x18c   :  { %v138_v57 = vadd.f32 %v1334_v55, %v137_v56 }
 0x18e   :  { %149 = vrot.lane.b32.xlu0 %v138_v57, %s1414_s10  ;;  %145 = vrot.lane.b32.xlu2 %v138_v57, %s1415_s11 }
 0x193   :  { %v140_v58 = vpop.f32.mrf.mxu0 }
 0x194   :  { %v1512_v59 = vadd.f32 %v1334_v55, %v140_v58 }
 0x196   :  { %147 = vrot.lane.b32.xlu2 %v1512_v59, %s1415_s11 }
 0x1e8   :  { %v1516_v60 = vpop.permute.xlu2 %145 }
 0x1e9   :  { %202 = vrot.lane.b32.xlu1 %v1516_v60, %s1414_s10 }
 0x1f0   :  { %v1520_v61 = vpop.permute.xlu2 %147 }
 0x1f1   :  { %228 = vrot.lane.b32.xlu2 %v1520_v61, %s1414_s10  ;;  %v1307_v45 = vpack.i.bf16 %v1520_v61, %v1516_v60 }
 0x1f9   :  { %176 = vrot.lane.b32.xlu2 %v1512_v59, %s1414_s10 }
 0x200   :  { %v150_v62 = vpop.permute.xlu0 %149 }
 0x201   :  { %1237 = vmatpush.xpose.msk.msra.mxu1 %vm151_vm8, %v150_v62 }
 0x204   :  { %1238 = vmatmul.msk.f32.vlgmr.msra.gmra.mxu1 %vm151_vm8, %v138_v57 }
 0x24b   :  { %v229_v63 = vpop.permute.xlu2 %228 }
 0x24c   :  { %1243 = vmatpush.xpose.msk.msrb.mxu1 %vm151_vm8, %v229_v63 }
 0x24f   :  { %1244 = vmatmul.msk.f32.vlgmr.msrb.gmra.mxu1 %vm151_vm8, %v1520_v61 }
 0x253   :  { %v177_v0 = vpop.permute.xlu2 %176 }
 0x254   :  { %1239 = vmatpush.xpose.msk.msrb.mxu0 %vm151_vm8, %v177_v0 }
 0x257   :  { %1240 = vmatmul.msk.f32.vlgmr.msrb.gmra.mxu0 %vm151_vm8, %v1512_v59 }
 0x25b   :  { %v203_v1 = vpop.permute.xlu1 %202 }
 0x25c   :  { %1241 = vmatpush.xpose.msk.msra.mxu3 %vm151_vm8, %v203_v1 }
 0x25f   :  { %1242 = vmatmul.msk.f32.vlgmr.msra.gmra.mxu3 %vm151_vm8, %v1516_v60 }
 0x281   :  { %v173_v4 = vpop.f32.mrf.mxu1 }
 0x282   :  { %v174_v5 = vadd.f32 %v173_v4, %v1540_v3 }
 0x284   :  { %v255_v6 = vsel %vm254_vm9, %v174_v5, -inf }
 0x285   :  { %256 = vmax.xlane.f32.xlu2 %v255_v6 }
 0x2cc   :  { %v251_v9 = vpop.f32.mrf.mxu1 }
 0x2cd   :  { %v252_v11 = vadd.f32 %v251_v9, %v1544_v8 }
 0x2cf   :  { %v264_v12 = vsel %vm254_vm9, %v252_v11, -inf }
 0x2d0   :  { %265 = vmax.xlane.f32.xlu1 %v264_v12  ;;  %v1335_v12 = vld [vmem:[%s1862_s3 + $0x1] ss:$0 sm:$0xff] }
 0x2d4   :  { %v199_v13 = vpop.f32.mrf.mxu0 }
 0x2d5   :  { %v200_v14 = vadd.f32 %v199_v13, %v1544_v8 }
 0x2d7   :  { %v258_v15 = vsel %vm254_vm9, %v200_v14, -inf }
 0x2d8   :  { %259 = vmax.xlane.f32.xlu2 %v258_v15 }
 0x2e2   :  { %v225_v16 = vpop.f32.mrf.mxu3 }
 0x2e3   :  { %v226_v17 = vadd.f32 %v225_v16, %v1540_v3 }
 0x2e5   :  { %v261_v18 = vsel %vm254_vm9, %v226_v17, -inf }
 0x2e6   :  { %262 = vmax.xlane.f32.xlu0 %v261_v18 }
 0x2f8   :  { %v257_v19 = vpop.xlane.xlu2 %256 }
 0x2f9   :  { %v267_v20 = vsub.f32 %v174_v5, %v257_v19 }
 0x2fb   :  { %v271_v27 = vmul.f32 1.442695, %v267_v20 }
 0x2fd   :  { %1357 = vpow2.f32 %v271_v27 }
 0x303   :  { %v1358_v28 = vpop.eup %1357 }
 0x304   :  { %v279_v29 = vsel %vm254_vm9, %v1358_v28, 0.0 }
 0x305   :  { %280 = vadd.xlane.f32.xlu0 %v279_v29 }
 0x319   :  { %299 = vrot.lane.b32.xlu0 %v138_v57, %s1416_s1 }
 0x321   :  { %1313 = vrot.lane.b32.xlu0 %v1312_v25, %s1417_s14 }
 0x343   :  { %v266_v30 = vpop.xlane.xlu1 %265 }
 0x344   :  { %v270_v31 = vsub.f32 %v252_v11, %v266_v30 }
 0x346   :  { %v277_v32 = vmul.f32 1.442695, %v270_v31 }
 0x348   :  { %1359 = vpow2.f32 %v277_v32 }
 0x34b   :  { %v260_v33 = vpop.xlane.xlu2 %259 }
 0x34c   :  { %v268_v34 = vsub.f32 %v200_v14, %v260_v33 }
 0x34e   :  { %v1360_v35 = vpop.eup %1359  ;;  %v273_v36 = vmul.f32 1.442695, %v268_v34 }
 0x34f   :  { %v288_v37 = vsel %vm254_vm9, %v1360_v35, 0.0 }
 0x350   :  { %1361 = vpow2.f32 %v273_v36  ;;  %289 = vadd.xlane.f32.xlu1 %v288_v37  ;;  %v95_v36 = vld [vmem:[%s1863_s2 + $0x30] sm:$0xff]  ;;  %v94_v37 = vld [vmem:[%s1863_s2 + $0x28] sm:$0xff] }
 0x356   :  { %v1362_v38 = vpop.eup %1361 }
 0x357   :  { %v282_v39 = vsel %vm254_vm9, %v1362_v38, 0.0 }
 0x358   :  { %283 = vadd.xlane.f32.xlu1 %v282_v39 }
 0x359   :  { %v263_v40 = vpop.xlane.xlu0 %262 }
 0x35a   :  { %v269_v41 = vsub.f32 %v226_v17, %v263_v40 }
 0x35c   :  { %v275_v42 = vmul.f32 1.442695, %v269_v41 }
 0x35e   :  { %1363 = vpow2.f32 %v275_v42 }
 0x364   :  { %v1364_v43 = vpop.eup %1363 }
 0x365   :  { %v285_v44 = vsel %vm254_vm9, %v1364_v43, 0.0 }
 0x366   :  { %286 = vadd.xlane.f32.xlu2 %v285_v44 }
 0x371   :  { %325 = vrot.lane.b32.xlu1 %v1512_v59, %s1416_s1 }
 0x378   :  { %v281_v46 = vpop.xlane.xlu0 %280 }
 0x379   :  { %1365 = vrcp.f32 %v281_v46 }
 0x37e   :  { %1308 = vrot.lane.b32.xlu2 %v1307_v45, %s1416_s1 }
 0x37f   :  { %v1366_v47 = vpop.eup %1365 }
 0x380   :  { %v295_v50 = vmul.f32 %v1366_v47, %v1358_v28 }
 0x386   :  { %1318 = vrot.lane.b32.xlu2 %v1317_v26, %s1417_s14 }
 0x38b   :  { %v300_v48 = vpop.permute.xlu0 %299 }
 0x38c   :  { %320 = vmatpush.msra.mxu2 %v300_v48 }
 0x38d   :  { %1245 = vmatmul.msk.f32.vlgmr.msra.gmra.mxu2 %vm254_vm9, %v295_v50 }
 0x393   :  { %v1314_v62 = vpop.permute.xlu0 %1313 }
 0x394   :  { %v1316_v63 = vunpack.i.h.bf16 %v1314_v62  ;;  %v1315_v0 = vunpack.i.l.bf16 %v1314_v62 }
 0x3c3   :  { %v290_v51 = vpop.xlane.xlu1 %289 }
 0x3c4   :  { %1367 = vrcp.f32 %v290_v51 }
 0x3ca   :  { %v1368_v55 = vpop.eup %1367 }
 0x3cb   :  { %v284_v52 = vpop.xlane.xlu1 %283  ;;  %v298_v25 = vmul.f32 %v1368_v55, %v1360_v35  ;;  %v1336_v55 = vld [vmem:[%s1862_s3 + $0x4] ss:$0 sm:$0xff] }
 0x3cc   :  { %1369 = vrcp.f32 %v284_v52 }
 0x3d2   :  { %v1370_v56 = vpop.eup %1369 }
 0x3d3   :  { %v296_v21 = vmul.f32 %v1370_v56, %v1362_v38  ;;  %v93_v38 = vld [vmem:[%s1863_s2 + $0x20] sm:$0xff] }
 0x3d9   :  { %v287_v53 = vpop.xlane.xlu2 %286 }
 0x3da   :  { %1371 = vrcp.f32 %v287_v53 }
 0x3e0   :  { %v1372_v57 = vpop.eup %1371 }
 0x3e1   :  { %v1309_v58 = vpop.permute.xlu2 %1308  ;;  %v297_v22 = vmul.f32 %v1372_v57, %v1364_v43 }
 0x3e2   :  { %v1310_v59 = vunpack.i.l.bf16 %v1309_v58  ;;  %v1311_v60 = vunpack.i.h.bf16 %v1309_v58 }
 0x3e3   :  { %v326_v61 = vpop.permute.xlu1 %325 }
 0x3e4   :  { %346 = vmatpush.msrb.mxu3 %v326_v61  ;;  %372 = vmatpush.msra.mxu1 %v1310_v59  ;;  %v1337_v59 = vld [vmem:[%s1862_s3 + $0x5] ss:$0 sm:$0xff] }
 0x3e5   :  { %398 = vmatpush.msrb.mxu2 %v1311_v60  ;;  %1246 = vmatmul.msk.f32.vlgmr.msrb.gmra.mxu3 %vm254_vm9, %v296_v21 }
 0x3e6   :  { %1247 = vmatmul.msk.f32.vlgmr.msra.gmra.mxu1 %vm254_vm9, %v297_v22  ;;  %1248 = vmatmul.msk.f32.vlgmr.msrb.gmra.mxu2 %vm254_vm9, %v298_v25 }
 0x3e7   :  { %448 = vmatpush.msra.mxu3 %v1315_v0  ;;  %v103_v0 = vld [vmem:[%s1863_s2 + $0x70] sm:$0xff] }
 0x3e9   :  { %v1319_v1 = vpop.permute.xlu2 %1318  ;;  %449 = vmatpush.msra.mxu3 %v1316_v63  ;;  %v104_v63 = vld [vmem:[%s1863_s2 + $0x78] sm:$0xff] }
 0x3ea   :  { %v1320_v2 = vunpack.i.l.bf16 %v1319_v1  ;;  %v1321_v4 = vunpack.i.h.bf16 %v1319_v1  ;;  %575 = vmatpush.msrb.mxu1 %v104_v63  ;;  %v102_v1 = vld [vmem:[%s1863_s2 + $0x68] sm:$0xff] }
 0x3ec   :  { %450 = vmatpush.msra.mxu3 %v1320_v2  ;;  %576 = vmatpush.msrb.mxu1 %v103_v0  ;;  %v101_v2 = vld [vmem:[%s1863_s2 + $0x60] sm:$0xff] }
 0x3ee   :  { %451 = vmatpush.msra.mxu3 %v1321_v4  ;;  %577 = vmatpush.msrb.mxu1 %v102_v1  ;;  %v100_v4 = vld [vmem:[%s1863_s2 + $0x58] sm:$0xff] }
 0x3f0   :  { %578 = vmatpush.msrb.mxu1 %v101_v2 }
 0x3f2   :  { %579 = vmatpush.msrb.mxu1 %v100_v4 }
 0x410   :  { %v322_v23 = vpop.f32.mrf.mxu2 }
 0x463   :  { %v374_v24 = vpop.f32.mrf.mxu1 }
 0x464   :  { %405 = vrot.lane.b32.xlu0 %v374_v24, %s1418_s15 }
 0x468   :  { %v348_v9 = vpop.f32.mrf.mxu3 }
 0x469   :  { %v400_v26 = vpop.f32.mrf.mxu2 }
 0x46a   :  { %407 = vrot.lane.b32.xlu2 %v400_v26, %s1418_s15 }
 0x4c4   :  { %v408_v7 = vpop.permute.xlu2 %407 }
 0x4c5   :  { %v412_v11 = vsel %vm151_vm8, %v348_v9, %v408_v7  ;;  %v97_v7 = vld [vmem:[%s1863_s2 + $0x40] sm:$0xff] }
 0x4c6   :  { %v1338_v9 = vld [vmem:[%s1862_s3 + $0x2] ss:$0 sm:$0xff] }
 0x4d6   :  { %v406_v5 = vpop.permute.xlu0 %405 }
 0x4d7   :  { %v411_v6 = vsel %vm151_vm8, %v322_v23, %v406_v5  ;;  %v99_v5 = vld [vmem:[%s1863_s2 + $0x50] sm:$0xff] }
 0x4d8   :  { %1249 = vmatmul.msk.f32.vlgmr.msra.gmra.mxu3 %vm24_vm0, %v411_v6  ;;  %v98_v6 = vld [vmem:[%s1863_s2 + $0x48] sm:$0xff]  ;;  %580 = vmatpush.msrb.mxu1 %v99_v5 }
 0x4da   :  { %581 = vmatpush.msrb.mxu1 %v98_v6 }
 0x4dc   :  { %582 = vmatpush.msrb.mxu1 %v97_v7 }
 0x4e0   :  { %1250 = vmatmul.msk.f32.gmra.mxu3 %vm24_vm0, %v412_v11 }
 0x55b   :  { %v453_v13 = vpop.f32.mrf.mxu3 }
 0x55c   :  { %v454_v14 = vadd.f32 %v1335_v12, %v453_v13 }
 0x55e   :  { %v459_v15 = vadd.f32 %v454_v14, %v1499_v49 }
 0x560   :  { %v461_v16 = vsel %vm24_vm0, %v459_v15, 0.0 }
 0x561   :  { %462 = vadd.xlane.f32.xlu0 %v461_v16 }
 0x563   :  { %v456_v17 = vpop.f32.mrf.mxu3 }
 0x564   :  { %v457_v18 = vadd.f32 %v1335_v12, %v456_v17 }
 0x566   :  { %v460_v19 = vadd.f32 %v457_v18, %v1503_v54  ;;  %v96_v54 = vld [vmem:[%s1863_s2 + $0x38] sm:$0xff] }
 0x567   :  { %530 = vmatpush.msra.mxu0 %v96_v54 }
 0x568   :  { %v464_v20 = vsel %vm24_vm0, %v460_v19, 0.0 }
 0x569   :  { %465 = vadd.xlane.f32.xlu1 %v464_v20  ;;  %531 = vmatpush.msra.mxu0 %v95_v36 }
 0x56b   :  { %532 = vmatpush.msra.mxu0 %v94_v37  ;;  %v1339_v37 = vld [vmem:[%s1862_s3 + $0x3] ss:$0 sm:$0xff] }
 0x56d   :  { %533 = vmatpush.msra.mxu0 %v93_v38 }
 0x5d4   :  { %v463_v27 = vpop.xlane.xlu0 %462 }
 0x5d5   :  { %v467_v28 = vmul.f32 %v463_v27, %v1457_v10 }
 0x5d7   :  { %v469_v29 = vsub.f32 %v459_v15, %v467_v28 }
 0x5d9   :  { %v471_v30 = vmul.f32 %v469_v29, %v469_v29 }
 0x5db   :  { %v473_v31 = vsel %vm24_vm0, %v471_v30, 0.0 }
 0x5dc   :  { %v466_v32 = vpop.xlane.xlu1 %465  ;;  %474 = vadd.xlane.f32.xlu2 %v473_v31 }
 0x5dd   :  { %v468_v49 = vmul.f32 %v466_v32, %v1457_v10 }
 0x5df   :  { %v470_v33 = vsub.f32 %v460_v19, %v468_v49 }
 0x5e1   :  { %v472_v34 = vmul.f32 %v470_v33, %v470_v33 }
 0x5e3   :  { %v476_v35 = vsel %vm24_vm0, %v472_v34, 0.0 }
 0x5e4   :  { %477 = vadd.xlane.f32.xlu0 %v476_v35 }
 0x64f   :  { %v475_v39 = vpop.xlane.xlu2 %474 }
 0x650   :  { %v479_v40 = vmul.f32 %v475_v39, %v1457_v10 }
 0x652   :  { %v481_v41 = vadd.f32 1e-12, %v479_v40 }
 0x654   :  { %1373 = vrsqrt.f32 %v481_v41  ;;  %vm489_vm11 = vweird.f32 %v481_v41 }
 0x657   :  { %v478_v42 = vpop.xlane.xlu0 %477 }
 0x658   :  { %v480_v43 = vmul.f32 %v478_v42, %v1457_v10 }
 0x65a   :  { %v1374_v44 = vpop.eup %1373  ;;  %v482_v45 = vadd.f32 1e-12, %v480_v43 }
 0x65b   :  { %v484_v46 = vmul.f32 %v1374_v44, %v481_v41  ;;  %vm490_vm10 = vweird.f32 %v1374_v44 }
 0x65c   :  { %1375 = vrsqrt.f32 %v482_v45  ;;  %vm491_vm12 = vmor %vm489_vm11, %vm490_vm10  ;;  %vm499_vm14 = vweird.f32 %v482_v45 }
 0x65d   :  { %v485_v47 = vmul.f32 %v1374_v44, %v484_v46 }
 0x65f   :  { %v486_v48 = vmul.f32 0.5, %v485_v47 }
 0x661   :  { %v487_v50 = vsub.f32 1.5, %v486_v48 }
 0x662   :  { %v1376_v51 = vpop.eup %1375 }
 0x663   :  { %v488_v52 = vmul.f32 %v1374_v44, %v487_v50  ;;  %v494_v53 = vmul.f32 %v1376_v51, %v482_v45  ;;  %vm500_vm13 = vweird.f32 %v1376_v51 }
 0x664   :  { %vm501_vm15 = vmor %vm499_vm14, %vm500_vm13 }
 0x665   :  { %v492_v56 = vsel %vm491_vm12, %v1374_v44, %v488_v52  ;;  %v495_v57 = vmul.f32 %v1376_v51, %v494_v53 }
 0x666   :  { %v503_v58 = vmul.f32 %v492_v56, %v469_v29 }
 0x667   :  { %v496_v60 = vmul.f32 0.5, %v495_v57 }
 0x668   :  { %v506_v61 = vmul.f32 %v1336_v55, %v503_v58  ;;  %v1654_v58 = vld [vmem:[%s1863_s2 + $0x98] sm:$0xff] }
 0x669   :  { %v497_v21 = vsub.f32 1.5, %v496_v60  ;;  %687 = vmatpush.msra.mxu2 %v1654_v58  ;;  %v1666_v60 = vld [vmem:[%s1863_s2 + $0x88] sm:$0xff] }
 0x66a   :  { %v509_v22 = vadd.f32 %v1337_v59, %v506_v61  ;;  %v1672_v61 = vld [vmem:[%s1863_s2 + $0x80] sm:$0xff] }
 0x66b   :  { %v498_v25 = vmul.f32 %v1376_v51, %v497_v21 }
 0x66c   :  { %1251 = vmatmul.msk.f32.vlgmr.msra.gmra.mxu0 %vm24_vm0, %v509_v22 }
 0x66d   :  { %v502_v23 = vsel %vm501_vm15, %v1376_v51, %v498_v25 }
 0x66e   :  { %v504_v24 = vmul.f32 %v502_v23, %v470_v33 }
 0x670   :  { %v507_v26 = vmul.f32 %v1336_v55, %v504_v24 }
 0x672   :  { %v510_v62 = vadd.f32 %v1337_v59, %v507_v26  ;;  %v1660_v59 = vld [vmem:[%s1863_s2 + $0x90] sm:$0xff] }
 0x673   :  { %688 = vmatpush.msra.mxu2 %v1660_v59  ;;  %v1322_v21 = vpack.i.bf16 %v1660_v59, %v1654_v58 }
 0x674   :  { %1252 = vmatmul.msk.f32.gmra.mxu0 %vm24_vm0, %v510_v62 }
 0x675   :  { %689 = vmatpush.msra.mxu2 %v1666_v60 }
 0x677   :  { %690 = vmatpush.msra.mxu2 %v1672_v61 }
 0x6e9   :  { %v535_v11 = vpop.f32.mrf.mxu0 }
 0x6ea   :  { %v536_v12 = vadd.f32 %v1338_v9, %v535_v11  ;;  %v1340_v11 = vld [vmem:[%s1862_s3 + $0x6] ss:$0 sm:$0xff] }
 0x6ec   :  { %v543_v13 = vmul.f32 0.044715, %v536_v12  ;;  %v541_v32 = vmul.f32 0.5, %v536_v12 }
 0x6ee   :  { %v545_v14 = vmul.f32 %v543_v13, %v536_v12 }
 0x6f0   :  { %v547_v15 = vmul.f32 %v545_v14, %v536_v12 }
 0x6f1   :  { %v538_v16 = vpop.f32.mrf.mxu0 }
 0x6f2   :  { %v549_v17 = vadd.f32 %v547_v15, %v536_v12  ;;  %v539_v18 = vadd.f32 %v1338_v9, %v538_v16  ;;  %v1341_v15 = vld [vmem:[%s1862_s3 + $0x7] ss:$0 sm:$0xff] }
 0x6f4   :  { %v551_v19 = vmul.f32 0.7978846, %v549_v17  ;;  %v544_v20 = vmul.f32 0.044715, %v539_v18  ;;  %v542_v35 = vmul.f32 0.5, %v539_v18 }
 0x6f6   :  { %1377 = vtanh.f32 %v551_v19  ;;  %v546_v27 = vmul.f32 %v544_v20, %v539_v18 }
 0x6f8   :  { %v548_v28 = vmul.f32 %v546_v27, %v539_v18 }
 0x6fa   :  { %v550_v29 = vadd.f32 %v548_v28, %v539_v18 }
 0x6fc   :  { %v1378_v30 = vpop.eup %1377  ;;  %v552_v31 = vmul.f32 0.7978846, %v550_v29 }
 0x6fd   :  { %v555_v49 = vadd.f32 1.0, %v1378_v30 }
 0x6fe   :  { %1379 = vtanh.f32 %v552_v31  ;;  %v1342_v31 = vld [vmem:[%s1862_s3 + $0x8] ss:$0 sm:$0xff] }
 0x6ff   :  { %v557_v33 = vmul.f32 %v555_v49, %v541_v32 }
 0x701   :  { %1253 = vmatmul.msk.f32.vlgmr.msrb.gmra.mxu1 %vm560_vm1, %v557_v33 }
 0x704   :  { %v1380_v34 = vpop.eup %1379 }
 0x705   :  { %v556_v54 = vadd.f32 1.0, %v1380_v34 }
 0x707   :  { %v558_v36 = vmul.f32 %v556_v54, %v542_v35 }
 0x709   :  { %1254 = vmatmul.msk.f32.gmra.mxu1 %vm560_vm1, %v558_v36 }
 0x77e   :  { %v584_v38 = vpop.f32.mrf.mxu1 }
 0x77f   :  { %v585_v39 = vadd.f32 %v1339_v37, %v584_v38 }
 0x781   :  { %v590_v40 = vadd.f32 %v585_v39, %v509_v22  ;;  %v1327_v22 = vpack.i.bf16 %v1672_v61, %v1666_v60 }
 0x783   :  { %v592_v41 = vsel %vm24_vm0, %v590_v40, 0.0 }
 0x784   :  { %593 = vadd.xlane.f32.xlu1 %v592_v41 }
 0x786   :  { %v587_v42 = vpop.f32.mrf.mxu1 }
 0x787   :  { %v588_v43 = vadd.f32 %v1339_v37, %v587_v42 }
 0x789   :  { %v591_v44 = vadd.f32 %v588_v43, %v510_v62 }
 0x78b   :  { %v595_v45 = vsel %vm24_vm0, %v591_v44, 0.0 }
 0x78c   :  { %596 = vadd.xlane.f32.xlu2 %v595_v45 }
 0x7f7   :  { %v594_v46 = vpop.xlane.xlu1 %593 }
 0x7f8   :  { %v598_v47 = vmul.f32 %v594_v46, %v1457_v10 }
 0x7fa   :  { %v600_v48 = vsub.f32 %v590_v40, %v598_v47 }
 0x7fc   :  { %v602_v50 = vmul.f32 %v600_v48, %v600_v48 }
 0x7fe   :  { %v604_v51 = vsel %vm24_vm0, %v602_v50, 0.0 }
 0x7ff   :  { %605 = vadd.xlane.f32.xlu0 %v604_v51  ;;  %v597_v52 = vpop.xlane.xlu2 %596 }
 0x800   :  { %v599_v53 = vmul.f32 %v597_v52, %v1457_v10 }
 0x802   :  { %v601_v55 = vsub.f32 %v591_v44, %v599_v53 }
 0x804   :  { %v603_v56 = vmul.f32 %v601_v55, %v601_v55 }
 0x806   :  { %v607_v57 = vsel %vm24_vm0, %v603_v56, 0.0 }
 0x807   :  { %608 = vadd.xlane.f32.xlu1 %v607_v57 }
 0x872   :  { %v606_v25 = vpop.xlane.xlu0 %605 }
 0x873   :  { %v610_v23 = vmul.f32 %v606_v25, %v1457_v10 }
 0x875   :  { %v612_v24 = vadd.f32 1e-12, %v610_v23 }
 0x877   :  { %1381 = vrsqrt.f32 %v612_v24  ;;  %vm620_vm3 = vweird.f32 %v612_v24 }
 0x87a   :  { %v609_v26 = vpop.xlane.xlu1 %608 }
 0x87b   :  { %v611_v62 = vmul.f32 %v609_v26, %v1457_v10 }
 0x87d   :  { %v1382_v63 = vpop.eup %1381  ;;  %v613_v0 = vadd.f32 1e-12, %v611_v62 }
 0x87e   :  { %v615_v1 = vmul.f32 %v1382_v63, %v612_v24  ;;  %vm621_vm2 = vweird.f32 %v1382_v63 }
 0x87f   :  { %1383 = vrsqrt.f32 %v613_v0  ;;  %vm622_vm4 = vmor %vm620_vm3, %vm621_vm2  ;;  %vm630_vm6 = vweird.f32 %v613_v0 }
 0x880   :  { %v616_v2 = vmul.f32 %v1382_v63, %v615_v1 }
 0x882   :  { %v617_v4 = vmul.f32 0.5, %v616_v2 }
 0x884   :  { %v618_v5 = vsub.f32 1.5, %v617_v4 }
 0x885   :  { %v1384_v6 = vpop.eup %1383 }
 0x886   :  { %v619_v7 = vmul.f32 %v1382_v63, %v618_v5  ;;  %v625_v9 = vmul.f32 %v1384_v6, %v613_v0  ;;  %vm631_vm5 = vweird.f32 %v1384_v6 }
 0x887   :  { %vm632_vm7 = vmor %vm630_vm6, %vm631_vm5 }
 0x888   :  { %v623_v12 = vsel %vm622_vm4, %v1382_v63, %v619_v7  ;;  %v626_v13 = vmul.f32 %v1384_v6, %v625_v9 }
 0x889   :  { %v634_v14 = vmul.f32 %v623_v12, %v600_v48 }
 0x88a   :  { %v627_v16 = vmul.f32 0.5, %v626_v13 }
 0x88b   :  { %v637_v17 = vmul.f32 %v1340_v11, %v634_v14 }
 0x88c   :  { %v628_v18 = vsub.f32 1.5, %v627_v16 }
 0x88d   :  { %v1687_v19 = vadd.f32 %v1341_v15, %v637_v17 }
 0x88e   :  { %v629_v20 = vmul.f32 %v1384_v6, %v628_v18 }
 0x88f   :  { %1279 = vmatmul.msk.f32.vlgmr.msra.gmra.mxu2 %vm24_vm0, %v1687_v19 }
 0x890   :  { %v633_v27 = vsel %vm632_vm7, %v1384_v6, %v629_v20 }
 0x891   :  { %v635_v28 = vmul.f32 %v633_v27, %v601_v55 }
 0x893   :  { %v638_v29 = vmul.f32 %v1340_v11, %v635_v28 }
 0x895   :  { %v1691_v30 = vadd.f32 %v1341_v15, %v638_v29 }
 0x897   :  { %1280 = vmatmul.msk.f32.gmra.mxu2 %vm24_vm0, %v1691_v30 }
 0x912   :  { %v692_v32 = vpop.f32.mrf.mxu2 }
 0x913   :  { %v1698_v49 = vadd.f32 %v1342_v31, %v692_v32 }
 0x915   :  { %704 = vrot.lane.b32.xlu1 %v1698_v49, %s1414_s10  ;;  %700 = vrot.lane.b32.xlu2 %v1698_v49, %s1415_s11 }
 0x91a   :  { %v695_v33 = vpop.f32.mrf.mxu2 }
 0x91b   :  { %v1704_v34 = vadd.f32 %v1342_v31, %v695_v33 }
 0x91d   :  { %702 = vrot.lane.b32.xlu0 %v1704_v34, %s1415_s11  ;;  %730 = vrot.lane.b32.xlu1 %v1704_v34, %s1414_s10 }
 0x96f   :  { %v701_v35 = vpop.permute.xlu2 %700 }
 0x970   :  { %756 = vrot.lane.b32.xlu0 %v701_v35, %s1414_s10 }
 0x987   :  { %v705_v54 = vpop.permute.xlu1 %704 }
 0x988   :  { %1281 = vmatpush.xpose.msk.msrb.mxu3 %vm151_vm8, %v705_v54 }
 0x98b   :  { %1282 = vmatmul.msk.f32.vlgmr.msrb.gmra.mxu3 %vm151_vm8, %v1698_v49 }
 0x98f   :  { %v703_v36 = vpop.permute.xlu0 %702  ;;  %v731_v37 = vpop.permute.xlu1 %730 }
 0x990   :  { %1283 = vmatpush.xpose.msk.msrb.mxu0 %vm151_vm8, %v731_v37  ;;  %782 = vrot.lane.b32.xlu2 %v703_v36, %s1414_s10 }
 0x993   :  { %1284 = vmatmul.msk.f32.vlgmr.msrb.gmra.mxu0 %vm151_vm8, %v1704_v34 }
 0x9e2   :  { %v757_v38 = vpop.permute.xlu0 %756 }
 0x9e3   :  { %1285 = vmatpush.xpose.msk.msrb.mxu2 %vm151_vm8, %v757_v38 }
 0x9e6   :  { %1286 = vmatmul.msk.f32.vlgmr.msrb.gmra.mxu2 %vm151_vm8, %v701_v35 }
 0x9ea   :  { %v783_v39 = vpop.permute.xlu2 %782 }
 0x9eb   :  { %1287 = vmatpush.xpose.msk.msra.mxu3 %vm151_vm8, %v783_v39 }
 0x9ee   :  { %1288 = vmatmul.msk.f32.vlgmr.msra.gmra.mxu3 %vm151_vm8, %v703_v36 }
 0xa0e   :  { %v727_v40 = vpop.f32.mrf.mxu3 }
 0xa0f   :  { %v728_v41 = vadd.f32 %v727_v40, %v1540_v3 }
 0xa10   :  { %v753_v50 = vpop.f32.mrf.mxu0 }
 0xa11   :  { %v808_v42 = vsel %vm254_vm9, %v728_v41, -inf  ;;  %v754_v51 = vadd.f32 %v753_v50, %v1544_v8 }
 0xa12   :  { %809 = vmax.xlane.f32.xlu1 %v808_v42 }
 0xa13   :  { %v811_v52 = vsel %vm254_vm9, %v754_v51, -inf }
 0xa69   :  { %v779_v43 = vpop.f32.mrf.mxu2 }
 0xa6a   :  { %v780_v44 = vadd.f32 %v779_v43, %v1540_v3 }
 0xa6c   :  { %v814_v45 = vsel %vm254_vm9, %v780_v44, -inf }
 0xa6d   :  { %815 = vmax.xlane.f32.xlu0 %v814_v45 }
 0xa71   :  { %v805_v46 = vpop.f32.mrf.mxu3 }
 0xa72   :  { %v806_v47 = vadd.f32 %v805_v46, %v1544_v8 }
 0xa74   :  { %v817_v48 = vsel %vm254_vm9, %v806_v47, -inf }
 0xa75   :  { %818 = vmax.xlane.f32.xlu2 %v817_v48 }
 0xa7d   :  { %812 = vmax.xlane.f32.xlu2 %v811_v52 }
 0xa85   :  { %v810_v56 = vpop.xlane.xlu1 %809 }
 0xa86   :  { %v820_v24 = vsub.f32 %v728_v41, %v810_v56  ;;  %v1343_v41 = vld [vmem:[%s1862_s3 + $0x9] ss:$0 sm:$0xff] }
 0xa88   :  { %v824_v62 = vmul.f32 1.442695, %v820_v24  ;;  %v1261_v24 = vld [vmem:[%s1863_s2 + $0xb0] sm:$0xff] }
 0xa95   :  { %930 = vrot.lane.b32.xlu2 %v703_v36, %s1416_s1 }
 0xa9d   :  { %1323 = vrot.lane.b32.xlu2 %v1322_v21, %s1417_s14 }
 0xae0   :  { %v816_v3 = vpop.xlane.xlu0 %815 }
 0xae1   :  { %v822_v53 = vsub.f32 %v780_v44, %v816_v3 }
 0xae3   :  { %v828_v55 = vmul.f32 1.442695, %v822_v53 }
 0xae5   :  { %1385 = vpow2.f32 %v828_v55 }
 0xae8   :  { %v819_v57 = vpop.xlane.xlu2 %818 }
 0xae9   :  { %v823_v25 = vsub.f32 %v806_v47, %v819_v57 }
 0xaeb   :  { %v1386_v23 = vpop.eup %1385  ;;  %v830_v8 = vmul.f32 1.442695, %v823_v25 }
 0xaec   :  { %v838_v26 = vsel %vm254_vm9, %v1386_v23, 0.0 }
 0xaed   :  { %1387 = vpow2.f32 %v830_v8  ;;  %839 = vadd.xlane.f32.xlu0 %v838_v26  ;;  %v1260_v8 = vld [vmem:[%s1863_s2 + $0xa8] sm:$0xff]  ;;  %v1259_v26 = vld [vmem:[%s1863_s2 + $0xa0] sm:$0xff] }
 0xaee   :  { %1389 = vpow2.f32 %v824_v62 }
 0xaf0   :  { %v813_v63 = vpop.xlane.xlu2 %812 }
 0xaf1   :  { %v821_v58 = vsub.f32 %v754_v51, %v813_v63 }
 0xaf3   :  { %v1388_v0 = vpop.eup %1387  ;;  %v826_v21 = vmul.f32 1.442695, %v821_v58 }
 0xaf4   :  { %v841_v59 = vsel %vm254_vm9, %v1388_v0, 0.0  ;;  %v1390_v2 = vpop.eup %1389 }
 0xaf5   :  { %842 = vadd.xlane.f32.xlu1 %v841_v59  ;;  %1391 = vpow2.f32 %v826_v21  ;;  %v832_v4 = vsel %vm254_vm9, %v1390_v2, 0.0 }
 0xaf8   :  { %v931_v1 = vpop.permute.xlu2 %930 }
 0xaf9   :  { %951 = vmatpush.msrb.mxu3 %v931_v1 }
 0xafb   :  { %v1392_v5 = vpop.eup %1391 }
 0xafc   :  { %v835_v6 = vsel %vm254_vm9, %v1392_v5, 0.0 }
 0xafd   :  { %833 = vadd.xlane.f32.xlu1 %v832_v4 }
 0xb00   :  { %v1324_v28 = vpop.permute.xlu2 %1323 }
 0xb01   :  { %904 = vrot.lane.b32.xlu0 %v701_v35, %s1416_s1  ;;  %v1326_v31 = vunpack.i.h.bf16 %v1324_v28  ;;  %v1325_v32 = vunpack.i.l.bf16 %v1324_v28 }
 0xb05   :  { %836 = vadd.xlane.f32.xlu1 %v835_v6 }
 0xb09   :  { %852 = vrot.lane.b32.xlu0 %v1698_v49, %s1416_s1 }
 0xb11   :  { %1328 = vrot.lane.b32.xlu0 %v1327_v22, %s1417_s14 }
 0xb1e   :  { %878 = vrot.lane.b32.xlu1 %v1704_v34, %s1416_s1 }
 0xb60   :  { %v840_v7 = vpop.xlane.xlu0 %839 }
 0xb68   :  { %v843_v9 = vpop.xlane.xlu1 %842 }
 0xb69   :  { %1393 = vrcp.f32 %v843_v9 }
 0xb6a   :  { %1395 = vrcp.f32 %v840_v7 }
 0xb6f   :  { %v1394_v11 = vpop.eup %1393 }
 0xb70   :  { %v1396_v12 = vpop.eup %1395  ;;  %v851_v13 = vmul.f32 %v1394_v11, %v1388_v0  ;;  %v834_v14 = vpop.xlane.xlu1 %833 }
 0xb71   :  { %1397 = vrcp.f32 %v834_v14  ;;  %v850_v15 = vmul.f32 %v1396_v12, %v1386_v23  ;;  %v1345_v12 = vld [vmem:[%s1862_s3 + $0xd] ss:$0 sm:$0xff] }
 0xb72   :  { %1292 = vmatmul.msk.f32.vlgmr.msrb.gmra.mxu3 %vm254_vm9, %v851_v13 }
 0xb73   :  { %v905_v16 = vpop.permute.xlu0 %904 }
 0xb74   :  { %925 = vmatpush.msra.mxu2 %v905_v16 }
 0xb75   :  { %1291 = vmatmul.msk.f32.vlgmr.msra.gmra.mxu2 %vm254_vm9, %v850_v15 }
 0xb77   :  { %v1398_v60 = vpop.eup %1397 }
 0xb78   :  { %v848_v61 = vmul.f32 %v1398_v60, %v1390_v2  ;;  %v837_v17 = vpop.xlane.xlu1 %836 }
 0xb79   :  { %1399 = vrcp.f32 %v837_v17 }
 0xb7b   :  { %v853_v22 = vpop.permute.xlu0 %852 }
 0xb7c   :  { %873 = vmatpush.msra.mxu0 %v853_v22 }
 0xb7d   :  { %1289 = vmatmul.msk.f32.vlgmr.msra.gmra.mxu0 %vm254_vm9, %v848_v61 }
 0xb7e   :  { %1001 = vmatpush.msrb.mxu0 %v1325_v32  ;;  %v1269_v32 = vld [vmem:[%s1863_s2 + $0xf0] sm:$0xff] }
 0xb7f   :  { %v1400_v18 = vpop.eup %1399 }
 0xb80   :  { %v849_v20 = vmul.f32 %v1400_v18, %v1392_v5  ;;  %1002 = vmatpush.msrb.mxu0 %v1326_v31  ;;  %v1344_v5 = vld [vmem:[%s1862_s3 + $0xc] ss:$0 sm:$0xff]  ;;  %v1270_v31 = vld [vmem:[%s1863_s2 + $0xf8] sm:$0xff] }
 0xb81   :  { %1127 = vmatpush.msrb.mxu2 %v1270_v31  ;;  %v1348_v31 = vld [vmem:[%s1862_s3 + $0xe] ss:$0 sm:$0xff] }
 0xb83   :  { %v1329_v29 = vpop.permute.xlu0 %1328  ;;  %1128 = vmatpush.msrb.mxu2 %v1269_v32 }
 0xb84   :  { %v1330_v49 = vunpack.i.l.bf16 %v1329_v29  ;;  %v1331_v33 = vunpack.i.h.bf16 %v1329_v29 }
 0xb86   :  { %1003 = vmatpush.msrb.mxu0 %v1330_v49  ;;  %v1268_v49 = vld [vmem:[%s1863_s2 + $0xe8] sm:$0xff] }
 0xb87   :  { %1129 = vmatpush.msrb.mxu2 %v1268_v49 }
 0xb88   :  { %1004 = vmatpush.msrb.mxu0 %v1331_v33  ;;  %v1267_v33 = vld [vmem:[%s1863_s2 + $0xe0] sm:$0xff] }
 0xb89   :  { %1130 = vmatpush.msrb.mxu2 %v1267_v33 }
 0xb90   :  { %v879_v27 = vpop.permute.xlu1 %878 }
 0xb91   :  { %899 = vmatpush.msra.mxu1 %v879_v27 }
 0xb92   :  { %1290 = vmatmul.msk.f32.vlgmr.msra.gmra.mxu1 %vm254_vm9, %v849_v20 }
 0xbf5   :  { %v953_v34 = vpop.f32.mrf.mxu3 }
 0xbf6   :  { %960 = vrot.lane.b32.xlu0 %v953_v34, %s1418_s15  ;;  %v1266_v34 = vld [vmem:[%s1863_s2 + $0xd8] sm:$0xff] }
 0xbf7   :  { %1131 = vmatpush.msrb.mxu2 %v1266_v34 }
 0xbf8   :  { %v927_v35 = vpop.f32.mrf.mxu2 }
 0xbf9   :  { %958 = vrot.lane.b32.xlu2 %v927_v35, %s1418_s15  ;;  %v1265_v35 = vld [vmem:[%s1863_s2 + $0xd0] sm:$0xff] }
 0xbfa   :  { %v875_v54 = vpop.f32.mrf.mxu0  ;;  %1132 = vmatpush.msrb.mxu2 %v1265_v35  ;;  %v1349_v35 = vld [vmem:[%s1862_s3 + $0xf] ss:$0 sm:$0xff] }
 0xc0f   :  { %v901_v38 = vpop.f32.mrf.mxu1 }
 0xc53   :  { %v959_v36 = vpop.permute.xlu2 %958 }
 0xc54   :  { %v964_v37 = vsel %vm151_vm8, %v875_v54, %v959_v36  ;;  %v1264_v54 = vld [vmem:[%s1863_s2 + $0xc8] sm:$0xff]  ;;  %v1263_v36 = vld [vmem:[%s1863_s2 + $0xc0] sm:$0xff] }
 0xc55   :  { %1293 = vmatmul.msk.f32.vlgmr.msrb.gmra.mxu0 %vm24_vm0, %v964_v37  ;;  %1133 = vmatpush.msrb.mxu2 %v1264_v54  ;;  %v1346_v37 = vld [vmem:[%s1862_s3 + $0xa] ss:$0 sm:$0xff] }
 0xc57   :  { %1134 = vmatpush.msrb.mxu2 %v1263_v36 }
 0xc68   :  { %v961_v39 = vpop.permute.xlu0 %960 }
 0xc69   :  { %v965_v40 = vsel %vm151_vm8, %v901_v38, %v961_v39 }
 0xc6a   :  { %1294 = vmatmul.msk.f32.gmra.mxu0 %vm24_vm0, %v965_v40 }
 0xcd2   :  { %v1006_v42 = vpop.f32.mrf.mxu0 }
 0xcd3   :  { %v1007_v43 = vadd.f32 %v1343_v41, %v1006_v42 }
 0xcd5   :  { %v1012_v44 = vadd.f32 %v1007_v43, %v1687_v19 }
 0xcd7   :  { %v1014_v45 = vsel %vm24_vm0, %v1012_v44, 0.0 }
 0xcd8   :  { %1015 = vadd.xlane.f32.xlu2 %v1014_v45 }
 0xce7   :  { %v1009_v46 = vpop.f32.mrf.mxu0 }
 0xce8   :  { %v1010_v47 = vadd.f32 %v1343_v41, %v1009_v46 }
 0xcea   :  { %v1013_v48 = vadd.f32 %v1010_v47, %v1691_v30  ;;  %v1262_v30 = vld [vmem:[%s1863_s2 + $0xb8] sm:$0xff] }
 0xceb   :  { %1083 = vmatpush.msrb.mxu1 %v1262_v30  ;;  %v1347_v30 = vld [vmem:[%s1862_s3 + $0xb] ss:$0 sm:$0xff] }
 0xcec   :  { %v1017_v50 = vsel %vm24_vm0, %v1013_v48, 0.0 }
 0xced   :  { %1018 = vadd.xlane.f32.xlu0 %v1017_v50  ;;  %1084 = vmatpush.msrb.mxu1 %v1261_v24 }
 0xcef   :  { %1085 = vmatpush.msrb.mxu1 %v1260_v8 }
 0xcf1   :  { %1086 = vmatpush.msrb.mxu1 %v1259_v26 }
 0xd4b   :  { %v1016_v51 = vpop.xlane.xlu2 %1015 }
 0xd4c   :  { %v1020_v52 = vmul.f32 %v1016_v51, %v1457_v10 }
 0xd4e   :  { %v1022_v3 = vsub.f32 %v1012_v44, %v1020_v52 }
 0xd50   :  { %v1024_v53 = vmul.f32 %v1022_v3, %v1022_v3 }
 0xd52   :  { %v1026_v55 = vsel %vm24_vm0, %v1024_v53, 0.0 }
 0xd53   :  { %1027 = vadd.xlane.f32.xlu1 %v1026_v55 }
 0xd60   :  { %v1019_v56 = vpop.xlane.xlu0 %1018 }
 0xd61   :  { %v1021_v19 = vmul.f32 %v1019_v56, %v1457_v10 }
 0xd63   :  { %v1023_v57 = vsub.f32 %v1013_v48, %v1021_v19 }
 0xd65   :  { %v1025_v25 = vmul.f32 %v1023_v57, %v1023_v57 }
 0xd67   :  { %v1029_v23 = vsel %vm24_vm0, %v1025_v25, 0.0 }
 0xd68   :  { %1030 = vadd.xlane.f32.xlu2 %v1029_v23 }
 0xdc6   :  { %v1028_v62 = vpop.xlane.xlu1 %1027 }
 0xdc7   :  { %v1032_v63 = vmul.f32 %v1028_v62, %v1457_v10 }
 0xdc9   :  { %v1034_v0 = vadd.f32 1e-12, %v1032_v63 }
 0xdcb   :  { %1401 = vrsqrt.f32 %v1034_v0  ;;  %vm1042_vm9 = vweird.f32 %v1034_v0 }
 0xdd1   :  { %v1402_v58 = vpop.eup %1401 }
 0xdd2   :  { %v1037_v59 = vmul.f32 %v1402_v58, %v1034_v0  ;;  %vm1043_vm8 = vweird.f32 %v1402_v58 }
 0xdd3   :  { %vm1044_vm10 = vmor %vm1042_vm9, %vm1043_vm8 }
 0xdd4   :  { %v1038_v21 = vmul.f32 %v1402_v58, %v1037_v59 }
 0xdd6   :  { %v1039_v1 = vmul.f32 0.5, %v1038_v21 }
 0xdd8   :  { %v1040_v2 = vsub.f32 1.5, %v1039_v1 }
 0xdda   :  { %v1041_v4 = vmul.f32 %v1402_v58, %v1040_v2 }
 0xddb   :  { %v1031_v6 = vpop.xlane.xlu2 %1030 }
 0xddc   :  { %v1045_v7 = vsel %vm1044_vm10, %v1402_v58, %v1041_v4  ;;  %v1033_v9 = vmul.f32 %v1031_v6, %v1457_v10 }
 0xddd   :  { %v1056_v11 = vmul.f32 %v1045_v7, %v1022_v3 }
 0xdde   :  { %v1035_v13 = vadd.f32 1e-12, %v1033_v9 }
 0xddf   :  { %v1059_v14 = vmul.f32 %v1344_v5, %v1056_v11 }
 0xde0   :  { %1403 = vrsqrt.f32 %v1035_v13  ;;  %vm1052_vm12 = vweird.f32 %v1035_v13 }
 0xde1   :  { %v1062_v15 = vadd.f32 %v1345_v12, %v1059_v14  ;;  %v1196_v14 = vld [vmem:[%s1861_s4 + $0x10] sm:$0xff] }
 0xde3   :  { %1295 = vmatmul.msk.f32.vlgmr.msrb.gmra.mxu1 %vm24_vm0, %v1062_v15 }
 0xde6   :  { %v1404_v16 = vpop.eup %1403 }
 0xde7   :  { %v1047_v60 = vmul.f32 %v1404_v16, %v1035_v13  ;;  %vm1053_vm11 = vweird.f32 %v1404_v16  ;;  %v1197_v13 = vld [vmem:[%s1861_s4 + $0x18] sm:$0xff] }
 0xde8   :  { %vm1054_vm13 = vmor %vm1052_vm12, %vm1053_vm11  ;;  %1218 = vmatpush.msra.mxu3 %v1197_v13 }
 0xde9   :  { %v1048_v61 = vmul.f32 %v1404_v16, %v1047_v60 }
 0xdea   :  { %1219 = vmatpush.msra.mxu3 %v1196_v14 }
 0xdeb   :  { %v1049_v22 = vmul.f32 0.5, %v1048_v61 }
 0xded   :  { %v1050_v17 = vsub.f32 1.5, %v1049_v22 }
 0xdef   :  { %v1051_v18 = vmul.f32 %v1404_v16, %v1050_v17 }
 0xdf1   :  { %v1055_v20 = vsel %vm1054_vm13, %v1404_v16, %v1051_v18  ;;  %v1194_v16 = vld [vmem:[%s1861_s4] sm:$0xff] }
 0xdf2   :  { %v1057_v27 = vmul.f32 %v1055_v20, %v1023_v57 }
 0xdf4   :  { %v1060_v28 = vmul.f32 %v1344_v5, %v1057_v27 }
 0xdf6   :  { %v1063_v29 = vadd.f32 %v1345_v12, %v1060_v28 }
 0xdf8   :  { %1296 = vmatmul.msk.f32.gmra.mxu1 %vm24_vm0, %v1063_v29 }
 0xe60   :  { %v1088_v38 = vpop.f32.mrf.mxu1 }
 0xe61   :  { %v1089_v39 = vadd.f32 %v1346_v37, %v1088_v38 }
 0xe63   :  { %v1096_v40 = vmul.f32 0.044715, %v1089_v39  ;;  %v1094_v46 = vmul.f32 0.5, %v1089_v39 }
 0xe65   :  { %v1098_v41 = vmul.f32 %v1096_v40, %v1089_v39 }
 0xe67   :  { %v1100_v42 = vmul.f32 %v1098_v41, %v1089_v39 }
 0xe69   :  { %v1102_v43 = vadd.f32 %v1100_v42, %v1089_v39 }
 0xe6b   :  { %v1104_v44 = vmul.f32 0.7978846, %v1102_v43 }
 0xe6d   :  { %1405 = vtanh.f32 %v1104_v44 }
 0xe73   :  { %v1406_v45 = vpop.eup %1405 }
 0xe74   :  { %v1108_v47 = vadd.f32 1.0, %v1406_v45 }
 0xe75   :  { %v1091_v48 = vpop.f32.mrf.mxu1 }
 0xe76   :  { %v1092_v50 = vadd.f32 %v1346_v37, %v1091_v48  ;;  %v1110_v51 = vmul.f32 %v1108_v47, %v1094_v46  ;;  %v1350_v47 = vld [vmem:[%s1861_s4 + $0x20] ss:$0 sm:$0xff] }
 0xe78   :  { %v1097_v52 = vmul.f32 0.044715, %v1092_v50  ;;  %1297 = vmatmul.msk.f32.vlgmr.msrb.gmra.mxu2 %vm560_vm1, %v1110_v51  ;;  %v1095_v57 = vmul.f32 0.5, %v1092_v50 }
 0xe7a   :  { %v1099_v3 = vmul.f32 %v1097_v52, %v1092_v50 }
 0xe7c   :  { %v1101_v53 = vmul.f32 %v1099_v3, %v1092_v50 }
 0xe7e   :  { %v1103_v55 = vadd.f32 %v1101_v53, %v1092_v50 }
 0xe80   :  { %v1105_v56 = vmul.f32 0.7978846, %v1103_v55 }
 0xe82   :  { %1407 = vtanh.f32 %v1105_v56 }
 0xe88   :  { %v1408_v19 = vpop.eup %1407 }
 0xe89   :  { %v1109_v25 = vadd.f32 1.0, %v1408_v19 }
 0xe8b   :  { %v1111_v23 = vmul.f32 %v1109_v25, %v1095_v57 }
 0xe8d   :  { %1298 = vmatmul.msk.f32.gmra.mxu2 %vm560_vm1, %v1111_v23 }
 0xefb   :  { %v1136_v24 = vpop.f32.mrf.mxu2 }
 0xefc   :  { %v1137_v8 = vadd.f32 %v1347_v30, %v1136_v24 }
 0xefe   :  { %v1142_v26 = vadd.f32 %v1137_v8, %v1062_v15  ;;  %v1195_v15 = vld [vmem:[%s1861_s4 + $0x8] sm:$0xff] }
 0xeff   :  { %1220 = vmatpush.msra.mxu3 %v1195_v15 }
 0xf00   :  { %v1144_v62 = vsel %vm24_vm0, %v1142_v26, 0.0 }
 0xf01   :  { %1145 = vadd.xlane.f32.xlu0 %v1144_v62  ;;  %1221 = vmatpush.msra.mxu3 %v1194_v16 }
 0xf10   :  { %v1139_v63 = vpop.f32.mrf.mxu2 }
 0xf11   :  { %v1140_v0 = vadd.f32 %v1347_v30, %v1139_v63 }
 0xf13   :  { %v1143_v58 = vadd.f32 %v1140_v0, %v1063_v29 }
 0xf15   :  { %v1147_v59 = vsel %vm24_vm0, %v1143_v58, 0.0 }
 0xf16   :  { %1148 = vadd.xlane.f32.xlu1 %v1147_v59 }
 0xf74   :  { %v1146_v21 = vpop.xlane.xlu0 %1145 }
 0xf75   :  { %v1150_v1 = vmul.f32 %v1146_v21, %v1457_v10 }
 0xf77   :  { %v1152_v2 = vsub.f32 %v1142_v26, %v1150_v1 }
 0xf79   :  { %v1154_v4 = vmul.f32 %v1152_v2, %v1152_v2 }
 0xf7b   :  { %v1156_v5 = vsel %vm24_vm0, %v1154_v4, 0.0 }
 0xf7c   :  { %1157 = vadd.xlane.f32.xlu2 %v1156_v5 }
 0xf89   :  { %v1149_v6 = vpop.xlane.xlu1 %1148 }
 0xf8a   :  { %v1151_v7 = vmul.f32 %v1149_v6, %v1457_v10 }
 0xf8c   :  { %v1153_v9 = vsub.f32 %v1143_v58, %v1151_v7 }
 0xf8e   :  { %v1155_v11 = vmul.f32 %v1153_v9, %v1153_v9 }
 0xf90   :  { %v1159_v12 = vsel %vm24_vm0, %v1155_v11, 0.0 }
 0xf91   :  { %1160 = vadd.xlane.f32.xlu0 %v1159_v12 }
 0xfef   :  { %v1158_v60 = vpop.xlane.xlu2 %1157 }
 0xff0   :  { %v1162_v61 = vmul.f32 %v1158_v60, %v1457_v10 }
 0xff2   :  { %v1164_v22 = vadd.f32 1e-12, %v1162_v61 }
 0xff4   :  { %1409 = vrsqrt.f32 %v1164_v22  ;;  %vm1172_vm15 = vweird.f32 %v1164_v22 }
 0xffa   :  { %v1410_v17 = vpop.eup %1409 }
 0xffb   :  { %v1167_v18 = vmul.f32 %v1410_v17, %v1164_v22  ;;  %vm1173_vm14 = vweird.f32 %v1410_v17 }
 0xffc   :  { %vm1174_vm1 = vmor %vm1172_vm15, %vm1173_vm14 }
 0xffd   :  { %v1168_v20 = vmul.f32 %v1410_v17, %v1167_v18 }
 0xfff   :  { %v1169_v27 = vmul.f32 0.5, %v1168_v20 }
0x1001   :  { %v1170_v28 = vsub.f32 1.5, %v1169_v27 }
0x1003   :  { %v1171_v29 = vmul.f32 %v1410_v17, %v1170_v28 }
0x1004   :  { %v1161_v32 = vpop.xlane.xlu0 %1160 }
0x1005   :  { %v1175_v49 = vsel %vm1174_vm1, %v1410_v17, %v1171_v29  ;;  %v1163_v33 = vmul.f32 %v1161_v32, %v1457_v10 }
0x1006   :  { %v1186_v34 = vmul.f32 %v1175_v49, %v1152_v2 }
0x1007   :  { %v1165_v54 = vadd.f32 1e-12, %v1163_v33 }
0x1008   :  { %v1189_v36 = vmul.f32 %v1348_v31, %v1186_v34 }
0x1009   :  { %1411 = vrsqrt.f32 %v1165_v54  ;;  %vm1182_vm3 = vweird.f32 %v1165_v54 }
0x100a   :  { %v1192_v37 = vadd.f32 %v1349_v35, %v1189_v36 }
0x100c   :  { %1299 = vmatmul.msk.f32.vlgmr.msra.gmra.mxu3 %vm24_vm0, %v1192_v37 }
0x100f   :  { %v1412_v38 = vpop.eup %1411 }
0x1010   :  { %v1177_v39 = vmul.f32 %v1412_v38, %v1165_v54  ;;  %vm1183_vm2 = vweird.f32 %v1412_v38 }
0x1011   :  { %vm1184_vm4 = vmor %vm1182_vm3, %vm1183_vm2 }
0x1012   :  { %v1178_v40 = vmul.f32 %v1412_v38, %v1177_v39 }
0x1014   :  { %v1179_v41 = vmul.f32 0.5, %v1178_v40 }
0x1016   :  { %v1180_v42 = vsub.f32 1.5, %v1179_v41 }
0x1018   :  { %v1181_v43 = vmul.f32 %v1412_v38, %v1180_v42 }
0x101a   :  { %v1185_v10 = vsel %vm1184_vm4, %v1412_v38, %v1181_v43 }
0x101b   :  { %v1187_v44 = vmul.f32 %v1185_v10, %v1153_v9 }
0x101d   :  { %v1190_v45 = vmul.f32 %v1348_v31, %v1187_v44 }
0x101f   :  { %v1193_v46 = vadd.f32 %v1349_v35, %v1190_v45 }
0x1021   :  { %1300 = vmatmul.msk.f32.gmra.mxu3 %vm24_vm0, %v1193_v46 }
0x108f   :  { %v1223_v48 = vpop.f32.mrf.mxu3 }
0x1090   :  { %v1224_v50 = vadd.f32 %v1350_v47, %v1223_v48 }
0x1092   :  { %1229 = vst [vmem:[%s1865_s5] sm:$0xff] %v1224_v50 }
0x10a4   :  { %v1226_v51 = vpop.f32.mrf.mxu3 }
0x10a5   :  { %v1227_v52 = vadd.f32 %v1350_v47, %v1226_v51 }
0x10a7   :  { %1230 = vst [vmem:[%s1865_s5 + $0x8] sm:$0xff] %v1227_v52 }

</bundles_post_ra>
